<compile_context>
chip_gen: v6e
topology: v6e:2x2x1
jax: 0.10.0
libtpu: 0.0.40
codegen_flags: <defaults>
</compile_context>

<pallas_src>
import functools

import jax
import jax.numpy as jnp
from jax import lax
from jax.experimental import pallas as pl
from jax.experimental.pallas import tpu as pltpu

N_PAD = 128   # padded atom count (sublane/lane extent of the NxN outputs)
D_PAD = 8     # padded coordinate dim (zeros beyond d -> distances unchanged)


def _distance_kernel(nb_ref, cut_ref, pos_col_ref, pos_row_ref,
                     bcol_ref, brow_ref, weight_ref, keep_ref, count_ref,
                     *, ndim, loop):
    """Pairwise edge weights + capped adjacency mask (radius_graph semantics).

    nb_ref      : (1,)  i32 SMEM   [max_num_neighbors]
    cut_ref     : (2,)  f32 SMEM   [cutoff_lower**2, cutoff_upper**2]
    pos_col_ref : (N_PAD, D_PAD) f32  zero-padded positions
    pos_row_ref : (D_PAD, N_PAD) f32  transposed zero-padded positions
    bcol_ref    : (N_PAD, 1) i32   batch id per atom (column form, -1 padded)
    brow_ref    : (1, N_PAD) i32   batch id per atom (row form, -2 padded)
    weight_ref  : (N_PAD, N_PAD) f32  ||pos_i - pos_j|| (0 on diag if loop)
    keep_ref    : (N_PAD, N_PAD) i8   1 where edge (i <- j) is kept
    count_ref   : (1, 1) i32 SMEM  total number of kept edges
    """
    max_nb = nb_ref[0]
    cl2 = cut_ref[0]
    cu2 = cut_ref[1]

    # Pairwise squared distances on the VPU: sum_k (x_ik - x_jk)^2.
    diff = pos_col_ref[:, 0:1] - pos_row_ref[0:1, :]
    d2 = diff * diff
    for k in range(1, ndim):
        diff = pos_col_ref[:, k:k + 1] - pos_row_ref[k:k + 1, :]
        d2 = d2 + diff * diff

    # 1-vreg iotas (no full 128x128 index planes kept live).
    row_i = lax.broadcasted_iota(jnp.int32, (N_PAD, 1), 0)   # target i (sublane)
    col_j = lax.broadcasted_iota(jnp.int32, (1, N_PAD), 1)   # source j (lane)
    is_self = row_i == col_j                                  # (N_PAD, N_PAD)

    # Padded atoms carry distinct batch sentinels (-1 vs -2), so same_batch is
    # already false for any pair involving padding -> no explicit valid mask.
    same_batch = bcol_ref[...] == brow_ref[...]
    within = d2 <= cu2           # radius_graph is inclusive at r
    lower_ok = d2 >= cl2         # == (edge_weight >= cutoff_lower)

    dist = jnp.sqrt(d2)          # EUP; mask path does not wait on it
    if loop:
        # self-loops kept by radius_graph(loop=True); weight explicitly 0
        weight = jnp.where(is_self, 0.0, dist)
        pair_ok = same_batch
    else:
        weight = dist
        pair_ok = same_batch & jnp.logical_not(is_self)

    # Retire the 16 f32 weight vregs early (vst slot overlaps later work).
    weight_ref[...] = weight

    mask = pair_ok & within & lower_ok

    # Inclusive lane prefix-sum via triangular matmul on the (otherwise idle)
    # MXU: s[i, j] = sum_{k <= j} mask[i, k].  0/1 inputs, f32 accumulate ->
    # exact integer counts up to 128.
    tri = (row_i <= col_j).astype(jnp.float32)                # U[k, j] = k <= j
    s = jnp.dot(mask.astype(jnp.float32), tri,
                preferred_element_type=jnp.float32)

    max_nb_f = max_nb.astype(jnp.float32)
    keep = mask & (s <= max_nb_f)          # first max_nb neighbors per row
    keep_ref[...] = keep.astype(jnp.int8)

    # Total kept edges = sum_i min(row_total_i, max_nb); row_total_i is the
    # scan tail (last lane).  Padded rows contribute 0.
    tail = s[:, N_PAD - 1:N_PAD]                               # (N_PAD, 1)
    total = jnp.sum(jnp.minimum(tail, max_nb_f))
    count_ref[0, 0] = total.astype(jnp.int32)


def distance_forward(pos, batch, *, cutoff_lower, cutoff_upper,
                     max_num_neighbors=32, return_vecs=False, loop=False):
    """JAX equivalent of Distance.forward.

    Returns (edge_index, edge_weight, edge_vec_or_None, num_edges).  The edge
    arrays have a fixed capacity of num_atoms * max_num_neighbors and are
    zero / `n`-padded past `num_edges` (TPU requires static output shapes).
    Convention: edge_index[0] = source/neighbor j, edge_index[1] = target i,
    so edge_vec = pos[edge_index[0]] - pos[edge_index[1]] as in the module.
    """
    n, d = pos.shape
    assert n <= N_PAD and d <= D_PAD

    pos32 = pos.astype(jnp.float32)
    pos_col = jnp.zeros((N_PAD, D_PAD), jnp.float32).at[:n, :d].set(pos32)
    pos_row = jnp.zeros((D_PAD, N_PAD), jnp.float32).at[:d, :n].set(pos32.T)
    b32 = batch.astype(jnp.int32)
    # Distinct sentinels past n so the kernel needs no explicit valid mask.
    b_col = jnp.full((N_PAD, 1), -1, jnp.int32).at[:n, 0].set(b32)
    b_row = jnp.full((1, N_PAD), -2, jnp.int32).at[0, :n].set(b32)

    nb = jnp.array([max_num_neighbors], jnp.int32)
    cut2 = jnp.array([cutoff_lower * cutoff_lower,
                      cutoff_upper * cutoff_upper], jnp.float32)

    kernel = functools.partial(_distance_kernel, ndim=d, loop=bool(loop))

    # TODO(synk): to use v7x's second TensorCore, batch several molecules into
    # one call with a leading "parallel" grid axis; the module API is a single
    # (num_atoms, dim) system so a single grid point is kept here.
    weight_mat, keep_mat, total = pl.pallas_call(
        kernel,
        out_shape=(jax.ShapeDtypeStruct((N_PAD, N_PAD), jnp.float32),
                   jax.ShapeDtypeStruct((N_PAD, N_PAD), jnp.int8),
                   jax.ShapeDtypeStruct((1, 1), jnp.int32)),
        in_specs=[pl.BlockSpec(memory_space=pltpu.MemorySpace.SMEM),
                  pl.BlockSpec(memory_space=pltpu.MemorySpace.SMEM),
                  pl.BlockSpec(memory_space=pltpu.MemorySpace.VMEM),
                  pl.BlockSpec(memory_space=pltpu.MemorySpace.VMEM),
                  pl.BlockSpec(memory_space=pltpu.MemorySpace.VMEM),
                  pl.BlockSpec(memory_space=pltpu.MemorySpace.VMEM)],
        out_specs=(pl.BlockSpec(memory_space=pltpu.MemorySpace.VMEM),
                   pl.BlockSpec(memory_space=pltpu.MemorySpace.VMEM),
                   pl.BlockSpec(memory_space=pltpu.MemorySpace.SMEM)),
    )(nb, cut2, pos_col, pos_row, b_col, b_row)

    keep = keep_mat.astype(bool)
    num_edges = total[0, 0]

    # Extract the capped edge list into fixed-capacity padded arrays.
    # TODO(synk): variable-length edge list has no static-shape equivalent on
    # TPU; longer term, replace nonzero with a kernel-emitted slot id + scatter.
    max_edges = n * max_num_neighbors
    i_idx, j_idx = jnp.nonzero(keep, size=max_edges, fill_value=n)
    edge_index = jnp.stack([j_idx, i_idx]).astype(jnp.int32)   # (2, max_edges)

    slot_valid = jnp.arange(max_edges) < num_edges

    if return_vecs:
        edge_vec = pos_col[edge_index[0], :d] - pos_col[edge_index[1], :d]
        # Weight from the vector norm (skips the 128x128 table gather); for
        # self-loops the zero vector gives the required 0 weight.
        edge_weight = jnp.sqrt(jnp.sum(edge_vec * edge_vec, axis=-1))
        edge_weight = jnp.where(slot_valid, edge_weight, 0.0)
        edge_vec = jnp.where(slot_valid[:, None], edge_vec, 0.0)
        return edge_index, edge_weight, edge_vec, num_edges

    # Flat 1-D gather (lowers better on TPU than a 2-D table gather).
    flat_idx = i_idx * N_PAD + j_idx
    edge_weight = weight_mat.reshape(-1)[flat_idx]
    edge_weight = jnp.where(slot_valid, edge_weight, 0.0)
    return edge_index, edge_weight, None, num_edges


if __name__ == "__main__":
    key = jax.random.PRNGKey(0)
    n_atoms = 16
    pos = jax.random.uniform(key, (n_atoms, 3), jnp.float32,
                             minval=-3.0, maxval=3.0)
    batch = jnp.concatenate([jnp.zeros(8, jnp.int32), jnp.ones(8, jnp.int32)])

    fwd = jax.jit(functools.partial(
        distance_forward,
        cutoff_lower=0.0, cutoff_upper=5.0,
        max_num_neighbors=32, return_vecs=True, loop=False))

    edge_index, edge_weight, edge_vec, num_edges = fwd(pos, batch)
    jax.block_until_ready((edge_index, edge_weight, edge_vec, num_edges))
    print("KERNEL_OK")
</pallas_src>

<mosaic_0001>
module attributes {stable_mosaic.version = 11 : i64} {
  func.func private @main(%arg0: i32) attributes {dimension_semantics = [#tpu.dimension_semantics<core_parallel>], iteration_bounds = array<i64: 2>, tpu.core_type = #tpu.core_type<sc_scalar_subcore>, window_params = []} {
    return
  }
}

module attributes {stable_mosaic.version = 11 : i64} {
  func.func private @main(%arg0: i32) attributes {dimension_semantics = [#tpu.dimension_semantics<core_parallel>], iteration_bounds = array<i64: 2>, tpu.core_type = #tpu.core_type<sc_scalar_subcore>, window_params = []} {
    return
  }
}

module attributes {stable_mosaic.version = 11 : i64} {
  func.func @_distance_kernel(%arg0: memref<1xi32, #tpu.memory_space<smem>>, %arg1: memref<2xf32, #tpu.memory_space<smem>>, %arg2: memref<128x8xf32, #tpu.memory_space<vmem>>, %arg3: memref<8x128xf32, #tpu.memory_space<vmem>>, %arg4: memref<128x1xi32, #tpu.memory_space<vmem>>, %arg5: memref<1x128xi32, #tpu.memory_space<vmem>>, %arg6: memref<128x128xf32, #tpu.memory_space<vmem>>, %arg7: memref<128x128xi8, #tpu.memory_space<vmem>>, %arg8: memref<1x1xi32, #tpu.memory_space<smem>>) attributes {dimension_semantics = [], scalar_prefetch = 0 : i64, scratch_operands = 0 : i64, tpu.core_type = #tpu.core_type<tc>} {
    %c0 = arith.constant 0 : index
    %0 = memref.load %arg0[%c0] : memref<1xi32, #tpu.memory_space<smem>>
    %c0_0 = arith.constant 0 : index
    %1 = memref.load %arg1[%c0_0] : memref<2xf32, #tpu.memory_space<smem>>
    %c1 = arith.constant 1 : index
    %2 = memref.load %arg1[%c1] : memref<2xf32, #tpu.memory_space<smem>>
    %c0_1 = arith.constant 0 : index
    %c0_2 = arith.constant 0 : index
    %3 = vector.load %arg2[%c0_1, %c0_2] : memref<128x8xf32, #tpu.memory_space<vmem>>, vector<128x1xf32>
    %c0_3 = arith.constant 0 : index
    %c0_4 = arith.constant 0 : index
    %4 = vector.load %arg3[%c0_3, %c0_4] : memref<8x128xf32, #tpu.memory_space<vmem>>, vector<1x128xf32>
    %5 = vector.broadcast %3 : vector<128x1xf32> to vector<128x128xf32>
    %6 = vector.broadcast %4 : vector<1x128xf32> to vector<128x128xf32>
    %7 = arith.subf %5, %6 : vector<128x128xf32>
    %8 = arith.mulf %7, %7 : vector<128x128xf32>
    %c0_5 = arith.constant 0 : index
    %c1_6 = arith.constant 1 : index
    %9 = vector.load %arg2[%c0_5, %c1_6] : memref<128x8xf32, #tpu.memory_space<vmem>>, vector<128x1xf32>
    %c1_7 = arith.constant 1 : index
    %c0_8 = arith.constant 0 : index
    %10 = vector.load %arg3[%c1_7, %c0_8] : memref<8x128xf32, #tpu.memory_space<vmem>>, vector<1x128xf32>
    %11 = vector.broadcast %9 : vector<128x1xf32> to vector<128x128xf32>
    %12 = vector.broadcast %10 : vector<1x128xf32> to vector<128x128xf32>
    %13 = arith.subf %11, %12 : vector<128x128xf32>
    %14 = arith.mulf %13, %13 : vector<128x128xf32>
    %15 = arith.addf %8, %14 : vector<128x128xf32>
    %c0_9 = arith.constant 0 : index
    %c2 = arith.constant 2 : index
    %16 = vector.load %arg2[%c0_9, %c2] : memref<128x8xf32, #tpu.memory_space<vmem>>, vector<128x1xf32>
    %c2_10 = arith.constant 2 : index
    %c0_11 = arith.constant 0 : index
    %17 = vector.load %arg3[%c2_10, %c0_11] : memref<8x128xf32, #tpu.memory_space<vmem>>, vector<1x128xf32>
    %18 = vector.broadcast %16 : vector<128x1xf32> to vector<128x128xf32>
    %19 = vector.broadcast %17 : vector<1x128xf32> to vector<128x128xf32>
    %20 = arith.subf %18, %19 : vector<128x128xf32>
    %21 = arith.mulf %20, %20 : vector<128x128xf32>
    %22 = arith.addf %15, %21 : vector<128x128xf32>
    %23 = tpu.iota {dimensions = array<i32: 0>} : vector<128x1xi32>
    %24 = tpu.iota {dimensions = array<i32: 1>} : vector<1x128xi32>
    %25 = vector.broadcast %23 : vector<128x1xi32> to vector<128x128xi32>
    %26 = vector.broadcast %24 : vector<1x128xi32> to vector<128x128xi32>
    %27 = arith.cmpi eq, %25, %26 : vector<128x128xi32>
    %c0_12 = arith.constant 0 : index
    %c0_13 = arith.constant 0 : index
    %28 = vector.load %arg4[%c0_12, %c0_13] : memref<128x1xi32, #tpu.memory_space<vmem>>, vector<128x1xi32>
    %c0_14 = arith.constant 0 : index
    %c0_15 = arith.constant 0 : index
    %29 = vector.load %arg5[%c0_14, %c0_15] : memref<1x128xi32, #tpu.memory_space<vmem>>, vector<1x128xi32>
    %30 = vector.broadcast %28 : vector<128x1xi32> to vector<128x128xi32>
    %31 = vector.broadcast %29 : vector<1x128xi32> to vector<128x128xi32>
    %32 = arith.cmpi eq, %30, %31 : vector<128x128xi32>
    %33 = vector.broadcast %2 : f32 to vector<128x128xf32>
    %34 = arith.cmpf ole, %22, %33 : vector<128x128xf32>
    %35 = vector.broadcast %1 : f32 to vector<128x128xf32>
    %36 = arith.cmpf oge, %22, %35 : vector<128x128xf32>
    %37 = math.sqrt %22 : vector<128x128xf32>
    %cst = arith.constant dense<true> : vector<128x128xi1>
    %38 = arith.xori %27, %cst : vector<128x128xi1>
    %39 = arith.andi %32, %38 : vector<128x128xi1>
    %c0_16 = arith.constant 0 : index
    %c0_17 = arith.constant 0 : index
    %40 = vector.load %arg6[%c0_16, %c0_17] : memref<128x128xf32, #tpu.memory_space<vmem>>, vector<128x128xf32>
    tpu.vector_store %arg6[%c0_16, %c0_17], %37 {strides = array<i32>} : memref<128x128xf32, #tpu.memory_space<vmem>>, vector<128x128xf32>,
    %41 = arith.andi %39, %34 : vector<128x128xi1>
    %42 = arith.andi %41, %36 : vector<128x128xi1>
    %43 = vector.broadcast %23 : vector<128x1xi32> to vector<128x128xi32>
    %44 = vector.broadcast %24 : vector<1x128xi32> to vector<128x128xi32>
    %45 = arith.cmpi sle, %43, %44 : vector<128x128xi32>
    %46 = arith.extui %45 : vector<128x128xi1> to vector<128x128xi32>
    %47 = arith.sitofp %46 : vector<128x128xi32> to vector<128x128xf32>
    %48 = arith.extui %42 : vector<128x128xi1> to vector<128x128xi32>
    %49 = arith.sitofp %48 : vector<128x128xi32> to vector<128x128xf32>
    %cst_18 = arith.constant dense<0.000000e+00> : vector<128x128xf32>
    %50 = tpu.matmul %49, %47, %cst_18 {dimension_numbers = #tpu.dot_dimension_numbers<[1], [0], [0], [1], [0, 0, 1, 1], [], []>} : vector<128x128xf32>, vector<128x128xf32>, vector<128x128xf32> -> vector<128x128xf32>
    %51 = arith.sitofp %0 : i32 to f32
    %52 = vector.broadcast %51 : f32 to vector<128x128xf32>
    %53 = arith.cmpf ole, %50, %52 : vector<128x128xf32>
    %54 = arith.andi %42, %53 : vector<128x128xi1>
    %55 = arith.extui %54 : vector<128x128xi1> to vector<128x128xi8>
    %c0_19 = arith.constant 0 : index
    %c0_20 = arith.constant 0 : index
    %56 = vector.load %arg7[%c0_19, %c0_20] : memref<128x128xi8, #tpu.memory_space<vmem>>, vector<128x128xi8>
    tpu.vector_store %arg7[%c0_19, %c0_20], %55 {strides = array<i32>} : memref<128x128xi8, #tpu.memory_space<vmem>>, vector<128x128xi8>,
    %57 = vector.extract_strided_slice %50 {offsets = [0, 127], sizes = [128, 1], strides = [1, 1]} : vector<128x128xf32> to vector<128x1xf32>
    %58 = vector.broadcast %51 : f32 to vector<128x1xf32>
    %59 = arith.minimumf %57, %58 : vector<128x1xf32>
    %60 = vector.shape_cast %59 : vector<128x1xf32> to vector<1x128x1xf32>
    %cst_21 = arith.constant dense<0.000000e+00> : vector<1xf32>
    %61 = vector.multi_reduction <add>, %60, %cst_21 [1, 2] : vector<1x128x1xf32> to vector<1xf32>
    %62 = vector.shape_cast %61 : vector<1xf32> to vector<1x1x1xf32>
    %63 = vector.extract %62[0, 0, 0] : f32 from vector<1x1x1xf32>
    %64 = arith.fptosi %63 : f32 to i32
    %c0_22 = arith.constant 0 : index
    %c0_23 = arith.constant 0 : index
    %65 = memref.load %arg8[%c0_22, %c0_23] : memref<1x1xi32, #tpu.memory_space<smem>>
    memref.store %64, %arg8[%c0_22, %c0_23] : memref<1x1xi32, #tpu.memory_space<smem>>
    return
  }
}

</mosaic_0001>

<bundles_post_ra>
// kernel: distance_forward.1
= control target key start
LH: loop header
LB: loop body
LE: loop exit
PB: predicated region body
PF: predicated region fallthrough
CT: control target
= control target key end

     0   :  { %15 = vsyncpa [#allocation6], 0  ;;  %s2853_s0 = inlined_call_operand.<no memory space> [shape: s32[1], index: 0, kind: input, shape index: {}]   ;;  %s2854_s1 = inlined_call_operand.vmem [shape: f32[2], index: 1, kind: input, shape index: {}]   ;;  %s2855_s2 = inlined_call_operand.vmem [shape: f32[128,8], index: 2, kind: input, shape index: {}]   ;;  %s2856_s3 = inlined_call_operand.vmem [shape: f32[8,128], index: 3, kind: input, shape index: {}]   ;;  %s2857_s4 = inlined_call_operand.vmem [shape: s32[128,1], index: 4, kind: input, shape index: {}]   ;;  %s2858_s5 = inlined_call_operand.vmem [shape: s32[1,128], index: 5, kind: input, shape index: {}]   ;;  %s2859_s6 = inlined_call_operand.hbm [shape: f32[128,128], index: 6, kind: output, shape index: {0}]   ;;  %s2860_s7 = inlined_call_operand.vmem [shape: s8[128,128], index: 7, kind: output, shape index: {1}]   ;;  %s2861_s8 = inlined_call_operand.hbm [shape: s32[1,1], index: 8, kind: output, shape index: {2}]  }
   0x1   :  { %16 = vsyncpa [#allocation4], 0 }
   0x2   :  { %17 = vsyncpa [#allocation5], 0  ;;  %s26_s29 = sshll.u32 %s2854_s1, 4  ;;  %s27_s29 = int_to_ptr.vmem [resolvable:$true] %s26_s29 }
   0x3   :  { %s1504_s30 = scalar_lea.vmem %s27_s29, 16  ;;  %p1509_p1 = scmp.lt.s32.totalorder %s27_s29, %s27_s29 }
   0x4   :  { %p1505_p0 = scmp.ne.s32.totalorder %s27_s29, %s1504_s30  ;;  %p1510_p2 = scmp.lt.s32.totalorder %s1504_s30, %s1504_s30 }
   0x6   :  { %p1511_p3 = por %p1510_p2, %p1509_p1 }
   0x8   :  { %p1512_p4 = pnand %p1511_p3, %p1505_p0 }
   0xa   :  { %1515 = shalt.err (!%p1512_p4)
}
   0xb   :  { %s1550_s9 = smov [#allocation3]  }
   0xc   :  { %29 = dma.vmem_to_smem %s27_s29, 16, %s1550_s9, [#allocation6]  }
   0xd   :  { %1544 = dma.done.wait [#allocation6], 16  }
   0xe   :  { %1545 = vsyncadd [#allocation6], 4294967280 }
   0xf   :  { %41 = sfence }
  0x10   :  { %v1613_v0 = vld [vmem:[%s2855_s2 + $0x8] sm:$0xff]  ;;  %v47_v1 = vld [vmem:[%s2855_s2] sm:$0xff]  ;;  %v1551_v2 = vmov 0   ;;  %v1624_v3 = vld [vmem:[%s2855_s2 + $0x18] sm:$0xff]  ;;  %v1552_v4 = vmov 1   ;;  %v1553_v5 = vmov 2   ;;  %v414_v12 = vlaneseq  ;;  %s985_s12 = scvt.s32.f32 %s2853_s0 }
  0x11   :  { %1450 = vset.pattern.permute.xlu1 %v1551_v2  ;;  %1449 = vset.pattern.permute.xlu0 %v1551_v2  ;;  %v1632_v6 = vld [vmem:[%s2855_s2 + $0x20] sm:$0xff]  ;;  %v49_v7 = vld [vmem:[%s2855_s2 + $0x10] sm:$0xff]  ;;  %v1642_v8 = vld [vmem:[%s2855_s2 + $0x28] sm:$0xff]  ;;  %v1554_v20 = vmov 1.0   ;;  %s1257_s23 = sld [smem:[#allocation3 + $0x1]]  ;;  %s1557_s1 = smov 1  }
  0x12   :  { %71 = vperm.xlu1 %1450, %v1613_v0   ;;  %66 = vperm.xlu0 %1449, %v47_v1   ;;  %v1648_v9 = vld [vmem:[%s2855_s2 + $0x30] sm:$0xff]  ;;  %v1654_v10 = vld [vmem:[%s2855_s2 + $0x38] sm:$0xff]  ;;  %v1661_v11 = vld [vmem:[%s2855_s2 + $0x40] sm:$0xff]  ;;  %v1673_v15 = vshrl.u32 %v414_v12, 7  ;;  %v1682_v17 = vand.u32 127, %v414_v12  ;;  %s45_s25 = sld [smem:[#allocation3]] }
  0x13   :  { %v1668_v13 = vld [vmem:[%s2855_s2 + $0x48] sm:$0xff]  ;;  %v449_v14 = vld [vmem:[%s2857_s4] sm:$0xff]  ;;  %v1680_v16 = vld [vmem:[%s2855_s2 + $0x50] sm:$0xff] }
  0x14   :  { %v1685_v18 = vadd.s32 120, %v1673_v15  ;;  %v1690_v19 = vadd.s32 112, %v1673_v15  ;;  %v1701_v21 = vld [vmem:[%s2855_s2 + $0x58] sm:$0xff]  ;;  %v1710_v22 = vadd.s32 104, %v1673_v15  ;;  %v450_v23 = vld [vmem:[%s2857_s4 + $0x8] sm:$0xff]  ;;  %v1730_v24 = vadd.s32 96, %v1673_v15 }
  0x15   :  { %v1744_v25 = vld [vmem:[%s2855_s2 + $0x60] sm:$0xff]  ;;  %v1753_v26 = vadd.s32 88, %v1673_v15  ;;  %v1770_v27 = vadd.s32 80, %v1673_v15  ;;  %v1785_v28 = vld [vmem:[%s2855_s2 + $0x68] sm:$0xff]  ;;  %v1794_v29 = vadd.s32 72, %v1673_v15  ;;  %v1811_v30 = vadd.s32 64, %v1673_v15 }
  0x16   :  { %1451 = vset.pattern.permute.xlu1 %v1552_v4  ;;  %81 = vperm.xlu0 %1449, %v1624_v3   ;;  %vm775_vm0 = vcmp.le.s32.totalorder %v1685_v18, %v1682_v17  ;;  %vm774_vm1 = vcmp.le.s32.totalorder %v1690_v19, %v1682_v17  ;;  %vm773_vm2 = vcmp.le.s32.totalorder %v1710_v22, %v1682_v17  ;;  %v1826_v31 = vld [vmem:[%s2855_s2 + $0x70] sm:$0xff]  ;;  %v1835_v32 = vadd.s32 56, %v1673_v15  ;;  %v1866_v35 = vld [vmem:[%s2855_s2 + $0x78] sm:$0xff]  ;;  %v453_v42 = vld [vmem:[%s2857_s4 + $0x20] sm:$0xff] }
  0x17   :  { %186 = vperm.xlu1 %1451, %v1613_v0   ;;  %1342 = vmatprep.subr.msk.mxu0 %vm775_vm0, %v1554_v20  ;;  %vm772_vm3 = vcmp.le.s32.totalorder %v1730_v24, %v1682_v17  ;;  %vm771_vm4 = vcmp.le.s32.totalorder %v1753_v26, %v1682_v17  ;;  %vm770_vm5 = vcmp.le.s32.totalorder %v1770_v27, %v1682_v17  ;;  %v1849_v33 = vadd.s32 48, %v1673_v15  ;;  %v451_v34 = vld [vmem:[%s2857_s4 + $0x10] sm:$0xff]  ;;  %v452_v39 = vld [vmem:[%s2857_s4 + $0x18] sm:$0xff]  ;;  %v454_v43 = vld [vmem:[%s2857_s4 + $0x28] sm:$0xff] }
  0x18   :  { %1343 = vmatpush3.msk.msra.mxu0 %vm775_vm0, %v1554_v20  ;;  %1398 = vmatprep.subr.msk.mxu1 %vm775_vm0, %v1554_v20  ;;  %vm769_vm6 = vcmp.le.s32.totalorder %v1794_v29, %v1682_v17  ;;  %vm768_vm7 = vcmp.le.s32.totalorder %v1811_v30, %v1682_v17  ;;  %vm767_vm8 = vcmp.le.s32.totalorder %v1835_v32, %v1682_v17  ;;  %v1875_v36 = vadd.s32 40, %v1673_v15  ;;  %v463_v44 = vld [vmem:[%s2857_s4 + $0x70] sm:$0xff]  ;;  %v456_v46 = vld [vmem:[%s2857_s4 + $0x38] sm:$0xff]  ;;  %v457_v47 = vld [vmem:[%s2857_s4 + $0x40] sm:$0xff] }
  0x19   :  { %1344 = vmatprep.subr.msk.mxu0 %vm774_vm1, %v1554_v20  ;;  %1414 = vmatpush3.msk.msra.mxu1 %vm775_vm0, %v1554_v20  ;;  %vm766_vm9 = vcmp.le.s32.totalorder %v1849_v33, %v1682_v17  ;;  %v1893_v37 = vadd.s32 32, %v1673_v15  ;;  %v1907_v38 = vadd.s32 24, %v1673_v15  ;;  %v1933_v40 = vadd.s32 16, %v1673_v15  ;;  %v455_v45 = vld [vmem:[%s2857_s4 + $0x30] sm:$0xff]  ;;  %v458_v51 = vld [vmem:[%s2857_s4 + $0x48] sm:$0xff] }
  0x1a   :  { %1455 = vset.pattern.permute.xlu0 %v1552_v4  ;;  %1345 = vmatpush3.msk.msra.mxu0 %vm774_vm1, %v1554_v20  ;;  %vm765_vm10 = vcmp.le.s32.totalorder %v1875_v36, %v1682_v17  ;;  %v1945_v41 = vadd.s32 8, %v1673_v15  ;;  %vm760_vm15 = vcmp.le.s32.totalorder %v1673_v15, %v1682_v17  ;;  %v2116_v52 = vld [vmem:[%s2856_s3] ss:$0 sm:$0xff]  ;;  %v2124_v55 = vld [vmem:[%s2856_s3 + $0x2] ss:$0 sm:$0xff]  ;;  %vm433_vm0 = vcmp.eq.s32.totalorder %v1673_v15, %v1682_v17 }
  0x1b   :  { %1452 = vset.pattern.permute.xlu1 %v1553_v5  ;;  %182 = vperm.xlu0 %1455, %v47_v1   ;;  %vm764_vm11 = vcmp.le.s32.totalorder %v1893_v37, %v1682_v17  ;;  %vm763_vm12 = vcmp.le.s32.totalorder %v1907_v38, %v1682_v17  ;;  %vm762_vm13 = vcmp.le.s32.totalorder %v1933_v40, %v1682_v17  ;;  %v2129_v56 = vld [vmem:[%s2856_s3 + $0x1] ss:$0 sm:$0xff] }
  0x1c   :  { %299 = vperm.xlu1 %1452, %v47_v1   ;;  %1346 = vmatprep.subr.msk.mxu0 %vm773_vm2, %v1554_v20  ;;  %vm761_vm14 = vcmp.le.s32.totalorder %v1945_v41, %v1682_v17 }
  0x1d   :  { %1347 = vmatpush3.msk.msra.mxu0 %vm773_vm2, %v1554_v20  ;;  %1399 = vmatprep.subr.msk.mxu1 %vm774_vm1, %v1554_v20 }
  0x1e   :  { %1348 = vmatprep.subr.msk.mxu0 %vm772_vm3, %v1554_v20  ;;  %1415 = vmatpush3.msk.msra.mxu1 %vm774_vm1, %v1554_v20 }
  0x1f   :  { %198 = vperm.xlu0 %1455, %v1632_v6   ;;  %1349 = vmatpush3.msk.msra.mxu0 %vm772_vm3, %v1554_v20 }
  0x20   :  { %1453 = vset.pattern.permute.xlu1 %v1551_v2  ;;  %1350 = vmatprep.subr.msk.mxu0 %vm771_vm4, %v1554_v20 }
  0x21   :  { %76 = vperm.xlu1 %1453, %v49_v7   ;;  %1351 = vmatpush3.msk.msra.mxu0 %vm771_vm4, %v1554_v20 }
  0x22   :  { %1352 = vmatprep.subr.msk.mxu0 %vm770_vm5, %v1554_v20  ;;  %1400 = vmatprep.subr.msk.mxu1 %vm773_vm2, %v1554_v20 }
  0x23   :  { %202 = vperm.xlu0 %1455, %v1642_v8   ;;  %1353 = vmatpush3.msk.msra.mxu0 %vm770_vm5, %v1554_v20 }
  0x24   :  { %1416 = vmatpush3.msk.msra.mxu1 %vm773_vm2, %v1554_v20  ;;  %1354 = vmatprep.subr.msk.mxu0 %vm769_vm6, %v1554_v20  ;;  %vm1555_vm2 = vmmov 1  }
  0x25   :  { %1454 = vset.pattern.permute.xlu1 %v1552_v4  ;;  %1355 = vmatpush3.msk.msra.mxu0 %vm769_vm6, %v1554_v20 }
  0x26   :  { %190 = vperm.xlu1 %1454, %v49_v7   ;;  %1356 = vmatprep.subr.msk.mxu0 %vm768_vm7, %v1554_v20 }
  0x27   :  { %206 = vperm.xlu0 %1455, %v1648_v9   ;;  %1357 = vmatpush3.msk.msra.mxu0 %vm768_vm7, %v1554_v20 }
  0x28   :  { %1401 = vmatprep.subr.msk.mxu1 %vm772_vm3, %v1554_v20  ;;  %1358 = vmatprep.subr.msk.mxu0 %vm767_vm8, %v1554_v20 }
  0x29   :  { %1359 = vmatpush3.msk.msra.mxu0 %vm767_vm8, %v1554_v20  ;;  %1417 = vmatpush3.msk.msra.mxu1 %vm772_vm3, %v1554_v20  ;;  %vm680_vm3 = vmxor %vm433_vm0, %vm1555_vm2  ;;  %vm434_vm0 = vcmp.eq.s32.totalorder %v1945_v41, %v1682_v17 }
  0x2a   :  { %194 = vperm.xlu1 %1454, %v1624_v3   ;;  %1360 = vmatprep.subr.msk.mxu0 %vm766_vm9, %v1554_v20 }
  0x2b   :  { %210 = vperm.xlu0 %1455, %v1654_v10   ;;  %1361 = vmatpush3.msk.msra.mxu0 %vm766_vm9, %v1554_v20 }
  0x2c   :  { %1362 = vmatprep.subr.msk.mxu0 %vm765_vm10, %v1554_v20  ;;  %1402 = vmatprep.subr.msk.mxu1 %vm771_vm4, %v1554_v20 }
  0x2d   :  { %1363 = vmatpush3.msk.msra.mxu0 %vm765_vm10, %v1554_v20  ;;  %1418 = vmatpush3.msk.msra.mxu1 %vm771_vm4, %v1554_v20 }
  0x2e   :  { %1456 = vset.pattern.permute.xlu1 %v1553_v5  ;;  %1364 = vmatprep.subr.msk.mxu0 %vm764_vm11, %v1554_v20 }
  0x2f   :  { %307 = vperm.xlu1 %1456, %v49_v7   ;;  %214 = vperm.xlu0 %1455, %v1661_v11   ;;  %v459_v7 = vld [vmem:[%s2857_s4 + $0x50] sm:$0xff] }
  0x30   :  { %1365 = vmatpush3.msk.msra.mxu0 %vm764_vm11, %v1554_v20  ;;  %1403 = vmatprep.subr.msk.mxu1 %vm770_vm5, %v1554_v20 }
  0x31   :  { %1366 = vmatprep.subr.msk.mxu0 %vm763_vm12, %v1554_v20  ;;  %1419 = vmatpush3.msk.msra.mxu1 %vm770_vm5, %v1554_v20 }
  0x32   :  { %1367 = vmatpush3.msk.msra.mxu0 %vm763_vm12, %v1554_v20  ;;  %1404 = vmatprep.subr.msk.mxu1 %vm769_vm6, %v1554_v20 }
  0x33   :  { %1457 = vset.pattern.permute.xlu1 %v1551_v2  ;;  %218 = vperm.xlu0 %1455, %v1668_v13  }
  0x34   :  { %467 = vperm.xlu1 %1457, %v449_v14   ;;  %1368 = vmatprep.subr.msk.mxu0 %vm762_vm13, %v1554_v20  ;;  %v460_v14 = vld [vmem:[%s2857_s4 + $0x58] sm:$0xff] }
  0x35   :  { %1369 = vmatpush3.msk.msra.mxu0 %vm762_vm13, %v1554_v20  ;;  %1420 = vmatpush3.msk.msra.mxu1 %vm769_vm6, %v1554_v20 }
  0x36   :  { %1370 = vmatprep.subr.msk.mxu0 %vm761_vm14, %v1554_v20  ;;  %1405 = vmatprep.subr.msk.mxu1 %vm768_vm7, %v1554_v20 }
  0x37   :  { %222 = vperm.xlu0 %1455, %v1680_v16   ;;  %1371 = vmatpush3.msk.msra.mxu0 %vm761_vm14, %v1554_v20 }
  0x38   :  { %86 = vperm.xlu1 %1457, %v1632_v6   ;;  %1372 = vmatprep.subr.msk.mxu0 %vm760_vm15, %v1554_v20 }
  0x39   :  { %1373 = vmatpush3.msk.msra.mxu0 %vm760_vm15, %v1554_v20  ;;  %1421 = vmatpush3.msk.msra.mxu1 %vm768_vm7, %v1554_v20 }
  0x3a   :  { %1406 = vmatprep.subr.msk.mxu1 %vm767_vm8, %v1554_v20 }
  0x3b   :  { %226 = vperm.xlu0 %1455, %v1701_v21   ;;  %1422 = vmatpush3.msk.msra.mxu1 %vm767_vm8, %v1554_v20 }
  0x3c   :  { %470 = vperm.xlu1 %1457, %v450_v23   ;;  %1407 = vmatprep.subr.msk.mxu1 %vm766_vm9, %v1554_v20 }
  0x3d   :  { %1423 = vmatpush3.msk.msra.mxu1 %vm766_vm9, %v1554_v20 }
  0x3e   :  { %1408 = vmatprep.subr.msk.mxu1 %vm765_vm10, %v1554_v20 }
  0x3f   :  { %230 = vperm.xlu0 %1455, %v1744_v25   ;;  %1424 = vmatpush3.msk.msra.mxu1 %vm765_vm10, %v1554_v20 }
  0x40   :  { %91 = vperm.xlu1 %1457, %v1642_v8   ;;  %1409 = vmatprep.subr.msk.mxu1 %vm764_vm11, %v1554_v20 }
  0x41   :  { %1425 = vmatpush3.msk.msra.mxu1 %vm764_vm11, %v1554_v20 }
  0x42   :  { %1410 = vmatprep.subr.msk.mxu1 %vm763_vm12, %v1554_v20 }
  0x43   :  { %234 = vperm.xlu0 %1455, %v1785_v28   ;;  %1426 = vmatpush3.msk.msra.mxu1 %vm763_vm12, %v1554_v20 }
  0x44   :  { %1458 = vset.pattern.permute.xlu1 %v1553_v5  ;;  %1411 = vmatprep.subr.msk.mxu1 %vm762_vm13, %v1554_v20 }
  0x45   :  { %315 = vperm.xlu1 %1458, %v1632_v6   ;;  %1427 = vmatpush3.msk.msra.mxu1 %vm762_vm13, %v1554_v20  ;;  %vm435_vm13 = vcmp.eq.s32.totalorder %v1933_v40, %v1682_v17 }
  0x46   :  { %1412 = vmatprep.subr.msk.mxu1 %vm761_vm14, %v1554_v20 }
  0x47   :  { %238 = vperm.xlu0 %1455, %v1826_v31   ;;  %1428 = vmatpush3.msk.msra.mxu1 %vm761_vm14, %v1554_v20  ;;  %vm682_vm14 = vmxor %vm435_vm13, %vm1555_vm2 }
  0x48   :  { %1413 = vmatprep.subr.msk.mxu1 %vm760_vm15, %v1554_v20 }
  0x49   :  { %1459 = vset.pattern.permute.xlu1 %v1551_v2  ;;  %1429 = vmatpush3.msk.msra.mxu1 %vm760_vm15, %v1554_v20 }
  0x4a   :  { %473 = vperm.xlu1 %1459, %v451_v34  }
  0x4b   :  { %242 = vperm.xlu0 %1455, %v1866_v35  }
  0x4e   :  { %96 = vperm.xlu1 %1459, %v1648_v9  }
  0x4f   :  { %1468 = vset.pattern.permute.xlu0 %v1553_v5 }
  0x50   :  { %303 = vperm.xlu0 %1468, %v1613_v0  }
  0x52   :  { %476 = vperm.xlu1 %1459, %v452_v39  }
  0x54   :  { %311 = vperm.xlu0 %1468, %v1624_v3  }
  0x56   :  { %101 = vperm.xlu1 %1459, %v1654_v10  }
  0x58   :  { %319 = vperm.xlu0 %1468, %v1642_v8  }
  0x5a   :  { %1460 = vset.pattern.permute.xlu1 %v1553_v5 }
  0x5b   :  { %323 = vperm.xlu1 %1460, %v1648_v9  }
  0x5c   :  { %327 = vperm.xlu0 %1468, %v1654_v10  }
  0x5f   :  { %1461 = vset.pattern.permute.xlu1 %v1551_v2 }
  0x60   :  { %479 = vperm.xlu1 %1461, %v453_v42   ;;  %335 = vperm.xlu0 %1468, %v1668_v13  }
  0x64   :  { %106 = vperm.xlu1 %1461, %v1661_v11   ;;  %343 = vperm.xlu0 %1468, %v1701_v21  }
  0x68   :  { %482 = vperm.xlu1 %1461, %v454_v43   ;;  %351 = vperm.xlu0 %1468, %v1785_v28   ;;  %v2164_v43 = vld [vmem:[%s2858_s5] ss:$0 sm:$0xff] }
  0x6c   :  { %111 = vperm.xlu1 %1461, %v1668_v13   ;;  %359 = vperm.xlu0 %1468, %v1866_v35  }
  0x70   :  { %1462 = vset.pattern.permute.xlu1 %v1553_v5  ;;  %1471 = vset.pattern.permute.xlu0 %v1551_v2 }
  0x71   :  { %331 = vperm.xlu1 %1462, %v1661_v11   ;;  %509 = vperm.xlu0 %1471, %v463_v44  }
  0x75   :  { %1463 = vset.pattern.permute.xlu1 %v1551_v2 }
  0x76   :  { %485 = vperm.xlu1 %1463, %v455_v45  }
  0x7a   :  { %116 = vperm.xlu1 %1463, %v1680_v16  }
  0x7e   :  { %488 = vperm.xlu1 %1463, %v456_v46   ;;  %v2170_v46 = vstv %s1257_s23 }
  0x82   :  { %121 = vperm.xlu1 %1463, %v1701_v21  }
  0x86   :  { %1464 = vset.pattern.permute.xlu1 %v1553_v5 }
  0x87   :  { %339 = vperm.xlu1 %1464, %v1680_v16  }
  0x8b   :  { %1465 = vset.pattern.permute.xlu1 %v1551_v2 }
  0x8c   :  { %491 = vperm.xlu1 %1465, %v457_v47  }
  0x8d   :  { %v2105_v48 = vpop.permute.xlu1 %71  ;;  %v67_v49 = vpop.permute.xlu0 %66 }
  0x8e   :  { %v148_v54 = vsub.f32 %v67_v49, %v2116_v52 }
  0x90   :  { %126 = vperm.xlu1 %1465, %v1744_v25   ;;  %v164_v58 = vmul.f32 %v148_v54, %v148_v54 }
  0x91   :  { %v2108_v50 = vpop.permute.xlu0 %81 }
  0x92   :  { %v2118_v53 = vpop.permute.xlu1 %186 }
  0x94   :  { %494 = vperm.xlu1 %1465, %v458_v51   ;;  %v2174_v51 = vstv %s45_s25 }
  0x96   :  { %v183_v57 = vpop.permute.xlu0 %182 }
  0x97   :  { %v249_v59 = vsub.f32 %v183_v57, %v2129_v56  ;;  %v300_v60 = vpop.permute.xlu1 %299 }
  0x98   :  { %v366_v61 = vsub.f32 %v300_v60, %v2124_v55  ;;  %131 = vperm.xlu1 %1465, %v1785_v28   ;;  %v1556_v60 = vmov 0.0  }
  0x99   :  { %v265_v62 = vmul.f32 %v249_v59, %v249_v59 }
  0x9a   :  { %v382_v63 = vmul.f32 %v366_v61, %v366_v61  ;;  %v2134_v0 = vpop.permute.xlu0 %198 }
  0x9b   :  { %v281_v1 = vadd.f32 %v265_v62, %v164_v58 }
  0x9c   :  { %1466 = vset.pattern.permute.xlu1 %v1553_v5  ;;  %v77_v3 = vpop.permute.xlu1 %76 }
  0x9d   :  { %v398_v4 = vadd.f32 %v382_v63, %v281_v1  ;;  %347 = vperm.xlu1 %1466, %v1744_v25   ;;  %v150_v13 = vsub.f32 %v77_v3, %v2116_v52  ;;  %v462_v1 = vld [vmem:[%s2857_s4 + $0x68] sm:$0xff] }
  0x9e   :  { %v2138_v6 = vpop.permute.xlu0 %202 }
  0x9f   :  { %1472 = vrsqrt.f32 %v398_v4  ;;  %v166_v23 = vmul.f32 %v150_v13, %v150_v13  ;;  %vm570_vm1 = vcmp.eq.f32.partialorder %v398_v4, inf  ;;  %v573_v44 = vand.u32 2147483648, %v398_v4  ;;  %v464_v13 = vld [vmem:[%s2857_s4 + $0x78] sm:$0xff] }
  0xa0   :  { %vm572_vm4 = vcmp.eq.f32.partialorder %v398_v4, 0.0  ;;  %vm535_vm7 = vcmp.le.f32.partialorder %v398_v4, %v2170_v46  ;;  %vm552_vm8 = vcmp.ge.f32.partialorder %v398_v4, %v2174_v51  ;;  %v254_v40 = vsub.f32 %v2138_v6, %v2129_v56 }
  0xa1   :  { %1467 = vset.pattern.permute.xlu1 %v1551_v2  ;;  %v191_v8 = vpop.permute.xlu1 %190 }
  0xa2   :  { %497 = vperm.xlu1 %1467, %v459_v7   ;;  %v2144_v9 = vpop.permute.xlu0 %206  ;;  %v251_v10 = vsub.f32 %v191_v8, %v2129_v56 }
  0xa4   :  { %v267_v16 = vmul.f32 %v251_v10, %v251_v10 }
  0xa5   :  { %v2147_v11 = vpop.permute.xlu1 %194 }
  0xa6   :  { %136 = vperm.xlu1 %1467, %v1826_v31   ;;  %v2150_v12 = vpop.permute.xlu0 %210  ;;  %v283_v39 = vadd.f32 %v267_v16, %v166_v23 }
  0xa7   :  { %v256_v6 = vsub.f32 %v2150_v12, %v2129_v56 }
  0xaa   :  { %500 = vperm.xlu1 %1467, %v460_v14   ;;  %v308_v20 = vpop.permute.xlu1 %307  ;;  %v2156_v21 = vpop.permute.xlu0 %214 }
  0xab   :  { %v368_v25 = vsub.f32 %v308_v20, %v2124_v55 }
  0xac   :  { %v1473_v28 = vpop.eup %1472 }
  0xad   :  { %v569_v34 = vmul.f32 %v1473_v28, %v398_v4  ;;  %v384_v42 = vmul.f32 %v368_v25, %v368_v25 }
  0xae   :  { %141 = vperm.xlu1 %1467, %v1866_v35   ;;  %v2168_v45 = vpop.permute.xlu0 %218 }
  0xaf   :  { %v571_v15 = vsel %vm570_vm1, %v398_v4, %v569_v34  ;;  %v2172_v47 = vadd.f32 %v384_v42, %v283_v39  ;;  %v468_v49 = vpop.permute.xlu1 %467  ;;  %v253_v4 = vsub.f32 %v2134_v0, %v2129_v56 }
  0xb0   :  { %v574_v54 = vsel %vm572_vm4, %v573_v44, %v571_v15  ;;  %vm518_vm5 = vcmp.eq.s32.totalorder %v468_v49, %v2164_v43 }
  0xb1   :  { %712 = vst [vmem:[#allocation7] sm:$0xff] %v574_v54  ;;  %1474 = vrsqrt.f32 %v2172_v47  ;;  %vm696_vm6 = vmand %vm518_vm5, %vm680_vm3  ;;  %v269_v20 = vmul.f32 %v253_v4, %v253_v4  ;;  %vm584_vm11 = vcmp.eq.f32.partialorder %v2172_v47, inf  ;;  %v587_v0 = vand.u32 2147483648, %v2172_v47 }
  0xb2   :  { %1469 = vset.pattern.permute.xlu1 %v1553_v5  ;;  %v223_v35 = vpop.permute.xlu0 %222  ;;  %vm728_vm9 = vmand %vm696_vm6, %vm535_vm7  ;;  %v461_v5 = vld [vmem:[%s2857_s4 + $0x60] sm:$0xff]  ;;  %vm586_vm12 = vcmp.eq.f32.partialorder %v2172_v47, 0.0  ;;  %vm537_vm5 = vcmp.le.f32.partialorder %v2172_v47, %v2170_v46  ;;  %vm436_vm7 = vcmp.eq.s32.totalorder %v1907_v38, %v1682_v17 }
  0xb3   :  { %355 = vperm.xlu1 %1469, %v1826_v31   ;;  %v87_v57 = vpop.permute.xlu1 %86  ;;  %v2183_v58 = vsub.f32 %v223_v35, %v2129_v56  ;;  %vm2185_vm10 = vmand %vm728_vm9, %vm552_vm8  ;;  %vm437_vm8 = vcmp.eq.s32.totalorder %v1893_v37, %v1682_v17 }
  0xb4   :  { %v1278_v61 = vsel %vm2185_vm10, 1.0, %v1556_v60  ;;  %v152_v7 = vsub.f32 %v87_v57, %v2116_v52  ;;  %vm681_vm3 = vmxor %vm434_vm0, %vm1555_vm2 }
  0xb5   :  { %1374 = vmatprep.mubr.f32.mxu0 %v1278_v61 }
  0xb6   :  { %v227_v62 = vpop.permute.xlu0 %226  ;;  %v168_v25 = vmul.f32 %v152_v7, %v152_v7 }
  0xb7   :  { %1470 = vset.pattern.permute.xlu1 %v1551_v2  ;;  %v2196_v31 = vpop.permute.xlu1 %470  ;;  %v2199_v63 = vsub.f32 %v227_v62, %v2129_v56 }
  0xb8   :  { %503 = vperm.xlu1 %1470, %v461_v5   ;;  %v285_v49 = vadd.f32 %v269_v20, %v168_v25  ;;  %v250_v5 = vsub.f32 %v2118_v53, %v2129_v56  ;;  %v252_v53 = vsub.f32 %v2147_v11, %v2129_v56  ;;  %vm519_vm4 = vcmp.eq.s32.totalorder %v2196_v31, %v2164_v43 }
  0xb9   :  { %vm2269_vm9 = vmand %vm519_vm4, %vm681_vm3 }
  0xba   :  { %v231_v3 = vpop.permute.xlu0 %230  ;;  %v266_v7 = vmul.f32 %v250_v5, %v250_v5  ;;  %vm2305_vm4 = vmxor %vm436_vm7, %vm1555_vm2 }
  0xbb   :  { %v92_v8 = vpop.permute.xlu1 %91  ;;  %v2208_v10 = vsub.f32 %v231_v3, %v2129_v56 }
  0xbc   :  { %506 = vperm.xlu1 %1470, %v462_v1   ;;  %v149_v1 = vsub.f32 %v2105_v48, %v2116_v52 }
  0xbe   :  { %v1475_v14 = vpop.eup %1474  ;;  %v235_v16 = vpop.permute.xlu0 %234  ;;  %v165_v48 = vmul.f32 %v149_v1, %v149_v1  ;;  %v2878_v1 = vmov 0 }
  0xbf   :  { %v583_v23 = vmul.f32 %v1475_v14, %v2172_v47  ;;  %v2215_v28 = vsub.f32 %v235_v16, %v2129_v56  ;;  %v153_v16 = vsub.f32 %v92_v8, %v2116_v52 }
  0xc0   :  { %512 = vperm.xlu1 %1470, %v464_v13   ;;  %v316_v34 = vpop.permute.xlu1 %315  ;;  %v151_v13 = vsub.f32 %v2108_v50, %v2116_v52  ;;  %v255_v50 = vsub.f32 %v2144_v9, %v2129_v56 }
  0xc1   :  { %v585_v39 = vsel %vm584_vm11, %v2172_v47, %v583_v23  ;;  %v370_v42 = vsub.f32 %v316_v34, %v2124_v55  ;;  %v282_v23 = vadd.f32 %v266_v7, %v165_v48  ;;  %v169_v9 = vmul.f32 %v153_v16, %v153_v16 }
  0xc2   :  { %v588_v44 = vsel %vm586_vm12, %v587_v0, %v585_v39  ;;  %v239_v15 = vpop.permute.xlu0 %238  ;;  %v167_v25 = vmul.f32 %v151_v13, %v151_v13  ;;  %v268_v0 = vmul.f32 %v252_v53, %v252_v53  ;;  %v270_v39 = vmul.f32 %v254_v40, %v254_v40 }
  0xc3   :  { %714 = vst [vmem:[#allocation7 + $0x10] sm:$0xff] %v588_v44  ;;  %v386_v54 = vmul.f32 %v370_v42, %v370_v42  ;;  %v2223_v35 = vsub.f32 %v239_v15, %v2129_v56  ;;  %v271_v15 = vmul.f32 %v255_v50, %v255_v50  ;;  %vm554_vm11 = vcmp.ge.f32.partialorder %v2172_v47, %v2174_v51 }
  0xc4   :  { %v272_v7 = vmul.f32 %v256_v6, %v256_v6  ;;  %v286_v13 = vadd.f32 %v270_v39, %v169_v9 }
  0xc5   :  { %v2225_v57 = vadd.f32 %v386_v54, %v285_v49  ;;  %v474_v61 = vpop.permute.xlu1 %473  ;;  %v284_v49 = vadd.f32 %v268_v0, %v167_v25 }
  0xc6   :  { %v243_v62 = vpop.permute.xlu0 %242  ;;  %vm520_vm15 = vcmp.eq.s32.totalorder %v474_v61, %v2164_v43 }
  0xc7   :  { %1476 = vrsqrt.f32 %v2225_v57  ;;  %v2235_v3 = vsub.f32 %v243_v62, %v2129_v56  ;;  %vm698_vm1 = vmand %vm520_vm15, %vm682_vm14  ;;  %vm598_vm15 = vcmp.eq.f32.partialorder %v2225_v57, inf  ;;  %v601_v40 = vand.u32 2147483648, %v2225_v57 }
  0xc8   :  { %vm2258_vm6 = vmand %vm698_vm1, %vm537_vm5  ;;  %vm600_vm1 = vcmp.eq.f32.partialorder %v2225_v57, 0.0 }
  0xc9   :  { %v97_v4 = vpop.permute.xlu1 %96  ;;  %vm2284_vm14 = vmand %vm2258_vm6, %vm554_vm11 }
  0xca   :  { %v154_v54 = vsub.f32 %v97_v4, %v2116_v52  ;;  %v2879_v1 = vsel %vm2284_vm14, 4294967295, %v2878_v1  ;;  %v1280_v25 = vsel %vm2284_vm14, 1.0, %v1556_v60  ;;  %vm2326_vm6 = vmxor %vm437_vm8, %vm1555_vm2 }
  0xcb   :  { %v304_v14 = vpop.permute.xlu0 %303 }
  0xcc   :  { %v367_v20 = vsub.f32 %v304_v14, %v2124_v55 }
  0xcd   :  { %v477_v11 = vpop.permute.xlu1 %476 }
  0xce   :  { %v383_v34 = vmul.f32 %v367_v20, %v367_v20  ;;  %vm521_vm5 = vcmp.eq.s32.totalorder %v477_v11, %v2164_v43  ;;  %v2886_v11 = vmov 0 }
  0xcf   :  { %v312_v41 = vpop.permute.xlu0 %311  ;;  %vm699_vm7 = vmand %vm521_vm5, %vm2305_vm4  ;;  %vm556_vm4 = vcmp.ge.f32.partialorder %v2225_v57, %v2174_v51 }
  0xd0   :  { %v2262_v42 = vadd.f32 %v383_v34, %v282_v23  ;;  %v369_v44 = vsub.f32 %v312_v41, %v2124_v55  ;;  %v170_v34 = vmul.f32 %v154_v54, %v154_v54 }
  0xd1   :  { %v102_v31 = vpop.permute.xlu1 %101 }
  0xd2   :  { %1478 = vrsqrt.f32 %v2262_v42  ;;  %v385_v61 = vmul.f32 %v369_v44, %v369_v44  ;;  %v155_v5 = vsub.f32 %v102_v31, %v2116_v52  ;;  %vm536_vm12 = vcmp.le.f32.partialorder %v2262_v42, %v2170_v46 }
  0xd3   :  { %v320_v62 = vpop.permute.xlu0 %319  ;;  %vm553_vm13 = vcmp.ge.f32.partialorder %v2262_v42, %v2174_v51  ;;  %vm729_vm0 = vmand %vm2269_vm9, %vm536_vm12  ;;  %v287_v37 = vadd.f32 %v271_v15, %v170_v34 }
  0xd4   :  { %v1477_v4 = vpop.eup %1476  ;;  %v371_v47 = vsub.f32 %v320_v62, %v2124_v55  ;;  %v2295_v14 = vadd.f32 %v385_v61, %v284_v49  ;;  %vm2297_vm3 = vmand %vm729_vm0, %vm553_vm13  ;;  %v171_v38 = vmul.f32 %v155_v5, %v155_v5 }
  0xd5   :  { %v597_v53 = vmul.f32 %v1477_v4, %v2225_v57  ;;  %v1279_v23 = vsel %vm2297_vm3, 1.0, %v1556_v60 }
  0xd6   :  { %v387_v20 = vmul.f32 %v371_v47, %v371_v47  ;;  %v324_v50 = vpop.permute.xlu1 %323  ;;  %1480 = vrsqrt.f32 %v2295_v14  ;;  %1375 = vmatmul.mubr.f32.vlgmr.msra.gmra.mxu0 %v1279_v23  ;;  %vm538_vm9 = vcmp.le.f32.partialorder %v2295_v14, %v2170_v46  ;;  %vm555_vm11 = vcmp.ge.f32.partialorder %v2295_v14, %v2174_v51 }
  0xd7   :  { %v599_v0 = vsel %vm598_vm15, %v2225_v57, %v597_v53  ;;  %v328_v39 = vpop.permute.xlu0 %327  ;;  %1377 = vmatprep.mubr.f32.mxu0 %v1280_v25  ;;  %v372_v8 = vsub.f32 %v324_v50, %v2124_v55  ;;  %vm731_vm8 = vmand %vm699_vm7, %vm538_vm9  ;;  %v288_v31 = vadd.f32 %v272_v7, %v171_v38  ;;  %vm539_vm15 = vcmp.le.f32.partialorder %v2225_v57, %v2170_v46 }
  0xd8   :  { %v602_v41 = vsel %vm600_vm1, %v601_v40, %v599_v0  ;;  %v2320_v6 = vadd.f32 %v387_v20, %v286_v13  ;;  %v373_v44 = vsub.f32 %v328_v39, %v2124_v55  ;;  %vm2341_vm12 = vmand %vm731_vm8, %vm555_vm11  ;;  %v2888_v7 = vmov 0 }
  0xd9   :  { %716 = vst [vmem:[#allocation7 + $0x20] sm:$0xff] %v602_v41  ;;  %v388_v49 = vmul.f32 %v372_v8, %v372_v8  ;;  %v2887_v11 = vsel %vm2341_vm12, 4294967295, %v2886_v11  ;;  %v1281_v61 = vsel %vm2341_vm12, 1.0, %v1556_v60  ;;  %vm438_vm7 = vcmp.eq.s32.totalorder %v1875_v36, %v1682_v17 }
  0xda   :  { %1482 = vrsqrt.f32 %v2320_v6  ;;  %v389_v12 = vmul.f32 %v373_v44, %v373_v44  ;;  %1378 = vmatmul.mubr.f32.gmra.mxu0 %v1281_v61  ;;  %v580_v47 = vand.u32 2147483648, %v2262_v42  ;;  %vm579_vm9 = vcmp.eq.f32.partialorder %v2262_v42, 0.0  ;;  %vm685_vm11 = vmxor %vm438_vm7, %vm1555_vm2 }
  0xdb   :  { %v480_v54 = vpop.permute.xlu1 %479  ;;  %v2349_v5 = vadd.f32 %v388_v49, %v287_v37  ;;  %v336_v16 = vpop.permute.xlu0 %335  ;;  %v258_v50 = vsub.f32 %v2168_v45, %v2129_v56  ;;  %v257_v45 = vsub.f32 %v2156_v21, %v2129_v56  ;;  %vm593_vm7 = vcmp.eq.f32.partialorder %v2295_v14, 0.0 }
  0xdc   :  { %vm522_vm13 = vcmp.eq.s32.totalorder %v480_v54, %v2164_v43  ;;  %v2351_v62 = vadd.f32 %v389_v12, %v288_v31  ;;  %v375_v25 = vsub.f32 %v336_v16, %v2124_v55  ;;  %v2890_v41 = vmov 0 }
  0xdd   :  { %vm700_vm0 = vmand %vm522_vm13, %vm2326_vm6  ;;  %1484 = vrsqrt.f32 %v2349_v5  ;;  %vm577_vm6 = vcmp.eq.f32.partialorder %v2262_v42, inf  ;;  %vm540_vm13 = vcmp.le.f32.partialorder %v2320_v6, %v2170_v46  ;;  %v274_v21 = vmul.f32 %v258_v50, %v258_v50 }
  0xde   :  { %vm732_vm1 = vmand %vm700_vm0, %vm539_vm15  ;;  %1486 = vrsqrt.f32 %v2351_v62  ;;  %vm591_vm0 = vcmp.eq.f32.partialorder %v2295_v14, inf  ;;  %v391_v49 = vmul.f32 %v375_v25, %v375_v25  ;;  %v273_v12 = vmul.f32 %v257_v45, %v257_v45 }
  0xdf   :  { %v1479_v15 = vpop.eup %1478  ;;  %v107_v4 = vpop.permute.xlu1 %106  ;;  %vm2360_vm5 = vmand %vm732_vm1, %vm556_vm4  ;;  %vm557_vm4 = vcmp.ge.f32.partialorder %v2320_v6, %v2174_v51 }
  0xe0   :  { %v2889_v7 = vsel %vm2360_vm5, 4294967295, %v2888_v7  ;;  %v576_v13 = vmul.f32 %v1479_v15, %v2262_v42  ;;  %v1282_v57 = vsel %vm2360_vm5, 1.0, %v1556_v60  ;;  %v156_v38 = vsub.f32 %v107_v4, %v2116_v52 }
  0xe1   :  { %1380 = vmatprep.mubr.f32.mxu0 %v1282_v57 }
  0xe2   :  { %v578_v53 = vsel %vm577_vm6, %v2262_v42, %v576_v13  ;;  %v594_v42 = vand.u32 2147483648, %v2295_v14  ;;  %v172_v61 = vmul.f32 %v156_v38, %v156_v38  ;;  %v2892_v38 = vmov 0 }
  0xe3   :  { %v581_v36 = vsel %vm579_vm9, %v580_v47, %v578_v53  ;;  %v483_v40 = vpop.permute.xlu1 %482  ;;  %v1481_v20 = vpop.eup %1480  ;;  %vm605_vm9 = vcmp.eq.f32.partialorder %v2320_v6, inf  ;;  %v615_v53 = vand.u32 2147483648, %v2349_v5 }
  0xe4   :  { %713 = vst [vmem:[#allocation7 + $0x8] sm:$0xff] %v581_v36  ;;  %vm523_vm8 = vcmp.eq.s32.totalorder %v483_v40, %v2164_v43  ;;  %v590_v23 = vmul.f32 %v1481_v20, %v2295_v14  ;;  %v622_v20 = vand.u32 2147483648, %v2351_v62  ;;  %v289_v50 = vadd.f32 %v273_v12, %v172_v61 }
  0xe5   :  { %vm701_vm15 = vmand %vm523_vm8, %vm685_vm11  ;;  %vm607_vm11 = vcmp.eq.f32.partialorder %v2320_v6, 0.0  ;;  %vm439_vm8 = vcmp.eq.s32.totalorder %v1849_v33, %v1682_v17 }
  0xe6   :  { %vm733_vm1 = vmand %vm701_vm15, %vm540_vm13  ;;  %v592_v34 = vsel %vm591_vm0, %v2295_v14, %v590_v23  ;;  %v608_v14 = vand.u32 2147483648, %v2320_v6  ;;  %vm612_vm13 = vcmp.eq.f32.partialorder %v2349_v5, inf  ;;  %vm614_vm15 = vcmp.eq.f32.partialorder %v2349_v5, 0.0 }
  0xe7   :  { %v1483_v0 = vpop.eup %1482  ;;  %v112_v39 = vpop.permute.xlu1 %111  ;;  %vm2392_vm6 = vmand %vm733_vm1, %vm557_vm4  ;;  %v595_v9 = vsel %vm593_vm7, %v594_v42, %v592_v34  ;;  %vm619_vm0 = vcmp.eq.f32.partialorder %v2351_v62, inf  ;;  %vm621_vm1 = vcmp.eq.f32.partialorder %v2351_v62, 0.0 }
  0xe8   :  { %v2891_v41 = vsel %vm2392_vm6, 4294967295, %v2890_v41  ;;  %v604_v8 = vmul.f32 %v1483_v0, %v2320_v6  ;;  %v157_v44 = vsub.f32 %v112_v39, %v2116_v52  ;;  %v1283_v56 = vsel %vm2392_vm6, 1.0, %v1556_v60  ;;  %715 = vst [vmem:[#allocation7 + $0x18] sm:$0xff] %v595_v9  ;;  %vm686_vm4 = vmxor %vm439_vm8, %vm1555_vm2 }
  0xe9   :  { %1381 = vmatmul.mubr.f32.gmra.mxu0 %v1283_v56 }
  0xea   :  { %v606_v37 = vsel %vm605_vm9, %v2320_v6, %v604_v8  ;;  %v173_v31 = vmul.f32 %v157_v44, %v157_v44  ;;  %v1485_v15 = vpop.eup %1484  ;;  %vm541_vm9 = vcmp.le.f32.partialorder %v2349_v5, %v2170_v46  ;;  %v344_v8 = vpop.permute.xlu0 %343 }
  0xeb   :  { %v609_v54 = vsel %vm607_vm11, %v608_v14, %v606_v37  ;;  %v1487_v47 = vpop.eup %1486  ;;  %v611_v57 = vmul.f32 %v1485_v15, %v2349_v5 }
  0xec   :  { %717 = vst [vmem:[#allocation7 + $0x28] sm:$0xff] %v609_v54  ;;  %v290_v4 = vadd.f32 %v274_v21, %v173_v31  ;;  %v332_v13 = vpop.permute.xlu1 %331  ;;  %v618_v36 = vmul.f32 %v1487_v47, %v2351_v62  ;;  %v2894_v21 = vmov 0 }
  0xed   :  { %v374_v6 = vsub.f32 %v332_v13, %v2124_v55  ;;  %v613_v16 = vsel %vm612_vm13, %v2349_v5, %v611_v57 }
  0xee   :  { %v2414_v40 = vadd.f32 %v391_v49, %v290_v4  ;;  %v616_v42 = vsel %vm614_vm15, %v615_v53, %v613_v16  ;;  %v620_v25 = vsel %vm619_vm0, %v2351_v62, %v618_v36  ;;  %vm558_vm15 = vcmp.ge.f32.partialorder %v2349_v5, %v2174_v51 }
  0xef   :  { %v390_v23 = vmul.f32 %v374_v6, %v374_v6  ;;  %718 = vst [vmem:[#allocation7 + $0x30] sm:$0xff] %v616_v42  ;;  %v623_v0 = vsel %vm621_vm1, %v622_v20, %v620_v25  ;;  %vm440_vm0 = vcmp.eq.s32.totalorder %v1835_v32, %v1682_v17  ;;  %v377_v5 = vsub.f32 %v344_v8, %v2124_v55 }
  0xf0   :  { %1488 = vrsqrt.f32 %v2414_v40  ;;  %719 = vst [vmem:[#allocation7 + $0x38] sm:$0xff] %v623_v0  ;;  %vm687_vm1 = vmxor %vm440_vm0, %vm1555_vm2  ;;  %v276_v49 = vmul.f32 %v2199_v63, %v2199_v63  ;;  %vm633_vm0 = vcmp.eq.f32.partialorder %v2414_v40, inf  ;;  %v275_v53 = vmul.f32 %v2183_v58, %v2183_v58 }
  0xf1   :  { %v2425_v45 = vadd.f32 %v390_v23, %v289_v50  ;;  %v486_v34 = vpop.permute.xlu1 %485  ;;  %v393_v15 = vmul.f32 %v377_v5, %v377_v5  ;;  %v2896_v0 = vmov 0  ;;  %v2898_v5 = vmov 0 }
  0xf2   :  { %vm524_vm7 = vcmp.eq.s32.totalorder %v486_v34, %v2164_v43 }
  0xf3   :  { %1490 = vrsqrt.f32 %v2425_v45  ;;  %vm702_vm11 = vmand %vm524_vm7, %vm686_vm4  ;;  %vm542_vm7 = vcmp.le.f32.partialorder %v2351_v62, %v2170_v46  ;;  %v629_v63 = vand.u32 2147483648, %v2425_v45 }
  0xf4   :  { %vm734_vm13 = vmand %vm702_vm11, %vm541_vm9 }
  0xf5   :  { %v117_v33 = vpop.permute.xlu1 %116  ;;  %vm2433_vm8 = vmand %vm734_vm13, %vm558_vm15  ;;  %vm559_vm13 = vcmp.ge.f32.partialorder %v2351_v62, %v2174_v51  ;;  %v636_v62 = vand.u32 2147483648, %v2414_v40 }
  0xf6   :  { %v2893_v38 = vsel %vm2433_vm8, 4294967295, %v2892_v38  ;;  %v1284_v39 = vsel %vm2433_vm8, 1.0, %v1556_v60  ;;  %v158_v44 = vsub.f32 %v117_v33, %v2116_v52 }
  0xf7   :  { %1383 = vmatprep.mubr.f32.mxu0 %v1284_v39  ;;  %v352_v39 = vpop.permute.xlu0 %351 }
  0xf8   :  { %v174_v47 = vmul.f32 %v158_v44, %v158_v44 }
  0xf9   :  { %v489_v9 = vpop.permute.xlu1 %488 }
  0xfa   :  { %vm525_vm4 = vcmp.eq.s32.totalorder %v489_v9, %v2164_v43  ;;  %v291_v23 = vadd.f32 %v275_v53, %v174_v47 }
  0xfb   :  { %vm703_vm9 = vmand %vm525_vm4, %vm687_vm1  ;;  %vm635_vm1 = vcmp.eq.f32.partialorder %v2414_v40, 0.0  ;;  %vm626_vm4 = vcmp.eq.f32.partialorder %v2425_v45, inf }
  0xfc   :  { %vm735_vm11 = vmand %vm703_vm9, %vm542_vm7  ;;  %vm441_vm7 = vcmp.eq.s32.totalorder %v1811_v30, %v1682_v17  ;;  %vm628_vm9 = vcmp.eq.f32.partialorder %v2425_v45, 0.0 }
  0xfd   :  { %v1489_v32 = vpop.eup %1488  ;;  %v122_v56 = vpop.permute.xlu1 %121  ;;  %vm2450_vm15 = vmand %vm735_vm11, %vm559_vm13 }
  0xfe   :  { %v2895_v21 = vsel %vm2450_vm15, 4294967295, %v2894_v21  ;;  %v632_v14 = vmul.f32 %v1489_v32, %v2414_v40  ;;  %v159_v37 = vsub.f32 %v122_v56, %v2116_v52  ;;  %v1285_v31 = vsel %vm2450_vm15, 1.0, %v1556_v60  ;;  %vm688_vm11 = vmxor %vm441_vm7, %vm1555_vm2 }
  0xff   :  { %1384 = vmatmul.mubr.f32.gmra.mxu0 %v1285_v31  ;;  %vm442_vm7 = vcmp.eq.s32.totalorder %v1794_v29, %v1682_v17 }
 0x100   :  { %v1491_v12 = vpop.eup %1490  ;;  %v634_v54 = vsel %vm633_vm0, %v2414_v40, %v632_v14  ;;  %v175_v61 = vmul.f32 %v159_v37, %v159_v37  ;;  %v278_v14 = vmul.f32 %v2215_v28, %v2215_v28 }
 0x101   :  { %v637_v4 = vsel %vm635_vm1, %v636_v62, %v634_v54  ;;  %v625_v13 = vmul.f32 %v1491_v12, %v2425_v45  ;;  %vm543_vm1 = vcmp.le.f32.partialorder %v2425_v45, %v2170_v46 }
 0x102   :  { %721 = vst [vmem:[#allocation7 + $0x48] sm:$0xff] %v637_v4  ;;  %v292_v57 = vadd.f32 %v276_v49, %v175_v61  ;;  %v340_v6 = vpop.permute.xlu1 %339 }
 0x103   :  { %v627_v36 = vsel %vm626_vm4, %v2425_v45, %v625_v13  ;;  %v376_v16 = vsub.f32 %v340_v6, %v2124_v55  ;;  %vm560_vm4 = vcmp.ge.f32.partialorder %v2425_v45, %v2174_v51  ;;  %v379_v45 = vsub.f32 %v352_v39, %v2124_v55 }
 0x104   :  { %v630_v20 = vsel %vm628_vm9, %v629_v63, %v627_v36  ;;  %v2475_v50 = vadd.f32 %v393_v15, %v292_v57  ;;  %v277_v13 = vmul.f32 %v2208_v10, %v2208_v10 }
 0x105   :  { %720 = vst [vmem:[#allocation7 + $0x40] sm:$0xff] %v630_v20  ;;  %v392_v42 = vmul.f32 %v376_v16, %v376_v16  ;;  %v395_v62 = vmul.f32 %v379_v45, %v379_v45  ;;  %v2900_v20 = vmov 0 }
 0x106   :  { %1492 = vrsqrt.f32 %v2475_v50 }
 0x107   :  { %v2479_v30 = vadd.f32 %v392_v42, %v291_v23  ;;  %v492_v25 = vpop.permute.xlu1 %491 }
 0x108   :  { %vm526_vm13 = vcmp.eq.s32.totalorder %v492_v25, %v2164_v43  ;;  %v360_v25 = vpop.permute.xlu0 %359 }
 0x109   :  { %1494 = vrsqrt.f32 %v2479_v30  ;;  %vm704_vm0 = vmand %vm526_vm13, %vm688_vm11  ;;  %v643_v28 = vand.u32 2147483648, %v2479_v30  ;;  %v381_v39 = vsub.f32 %v360_v25, %v2124_v55 }
 0x10a   :  { %vm736_vm9 = vmand %vm704_vm0, %vm543_vm1  ;;  %vm544_vm0 = vcmp.le.f32.partialorder %v2414_v40, %v2170_v46 }
 0x10b   :  { %v127_v58 = vpop.permute.xlu1 %126  ;;  %vm2487_vm8 = vmand %vm736_vm9, %vm560_vm4  ;;  %vm561_vm9 = vcmp.ge.f32.partialorder %v2414_v40, %v2174_v51  ;;  %v650_v40 = vand.u32 2147483648, %v2475_v50 }
 0x10c   :  { %v2897_v0 = vsel %vm2487_vm8, 4294967295, %v2896_v0  ;;  %v1286_v34 = vsel %vm2487_vm8, 1.0, %v1556_v60  ;;  %vm689_vm11 = vmxor %vm442_vm7, %vm1555_vm2  ;;  %v160_v9 = vsub.f32 %v127_v58, %v2116_v52  ;;  %vm647_vm7 = vcmp.eq.f32.partialorder %v2475_v50, inf }
 0x10d   :  { %1386 = vmatprep.mubr.f32.mxu1 %v1286_v34  ;;  %v2902_v34 = vmov 0 }
 0x10e   :  { %v176_v61 = vmul.f32 %v160_v9, %v160_v9 }
 0x10f   :  { %v495_v33 = vpop.permute.xlu1 %494 }
 0x110   :  { %vm527_vm13 = vcmp.eq.s32.totalorder %v495_v33, %v2164_v43  ;;  %v293_v53 = vadd.f32 %v277_v13, %v176_v61 }
 0x111   :  { %vm705_vm1 = vmand %vm527_vm13, %vm689_vm11  ;;  %vm649_vm11 = vcmp.eq.f32.partialorder %v2475_v50, 0.0  ;;  %vm640_vm13 = vcmp.eq.f32.partialorder %v2479_v30, inf }
 0x112   :  { %vm737_vm4 = vmand %vm705_vm1, %vm544_vm0  ;;  %vm443_vm0 = vcmp.eq.s32.totalorder %v1770_v27, %v1682_v17  ;;  %vm642_vm1 = vcmp.eq.f32.partialorder %v2479_v30, 0.0 }
 0x113   :  { %v1493_v29 = vpop.eup %1492  ;;  %v132_v8 = vpop.permute.xlu1 %131  ;;  %vm2504_vm8 = vmand %vm737_vm4, %vm561_vm9 }
 0x114   :  { %v2899_v5 = vsel %vm2504_vm8, 4294967295, %v2898_v5  ;;  %v646_v32 = vmul.f32 %v1493_v29, %v2475_v50  ;;  %v161_v44 = vsub.f32 %v132_v8, %v2116_v52  ;;  %v1287_v56 = vsel %vm2504_vm8, 1.0, %v1556_v60  ;;  %vm690_vm4 = vmxor %vm443_vm0, %vm1555_vm2 }
 0x115   :  { %1387 = vmatmul.mubr.f32.vlgmr.msra.gmra.mxu1 %v1287_v56  ;;  %vm444_vm0 = vcmp.eq.s32.totalorder %v1753_v26, %v1682_v17  ;;  %v280_v8 = vmul.f32 %v2235_v3, %v2235_v3 }
 0x116   :  { %v1495_v37 = vpop.eup %1494  ;;  %v648_v31 = vsel %vm647_vm7, %v2475_v50, %v646_v32  ;;  %v177_v49 = vmul.f32 %v161_v44, %v161_v44  ;;  %vm545_vm7 = vcmp.le.f32.partialorder %v2479_v30, %v2170_v46  ;;  %vm691_vm15 = vmxor %vm444_vm0, %vm1555_vm2  ;;  %vm445_vm0 = vcmp.eq.s32.totalorder %v1730_v24, %v1682_v17 }
 0x117   :  { %v651_v12 = vsel %vm649_vm11, %v650_v40, %v648_v31  ;;  %v639_v54 = vmul.f32 %v1495_v37, %v2479_v30  ;;  %v397_v37 = vmul.f32 %v381_v39, %v381_v39 }
 0x118   :  { %723 = vst [vmem:[#allocation7 + $0x58] sm:$0xff] %v651_v12  ;;  %v294_v15 = vadd.f32 %v278_v14, %v177_v49  ;;  %v348_v4 = vpop.permute.xlu1 %347  ;;  %v510_v49 = vpop.permute.xlu0 %509 }
 0x119   :  { %v641_v47 = vsel %vm640_vm13, %v2479_v30, %v639_v54  ;;  %v378_v63 = vsub.f32 %v348_v4, %v2124_v55 }
 0x11a   :  { %v644_v57 = vsel %vm642_vm1, %v643_v28, %v641_v47  ;;  %v2529_v6 = vadd.f32 %v395_v62, %v294_v15  ;;  %vm562_vm1 = vcmp.ge.f32.partialorder %v2479_v30, %v2174_v51  ;;  %v279_v62 = vmul.f32 %v2223_v35, %v2223_v35 }
 0x11b   :  { %722 = vst [vmem:[#allocation7 + $0x50] sm:$0xff] %v644_v57  ;;  %v394_v36 = vmul.f32 %v378_v63, %v378_v63 }
 0x11c   :  { %1496 = vrsqrt.f32 %v2529_v6 }
 0x11d   :  { %v2533_v27 = vadd.f32 %v394_v36, %v293_v53  ;;  %v498_v16 = vpop.permute.xlu1 %497 }
 0x11e   :  { %vm528_vm9 = vcmp.eq.s32.totalorder %v498_v16, %v2164_v43 }
 0x11f   :  { %1498 = vrsqrt.f32 %v2533_v27  ;;  %vm706_vm11 = vmand %vm528_vm9, %vm690_vm4  ;;  %vm546_vm9 = vcmp.le.f32.partialorder %v2475_v50, %v2170_v46  ;;  %v657_v40 = vand.u32 2147483648, %v2533_v27  ;;  %vm547_vm6 = vcmp.le.f32.partialorder %v2533_v27, %v2170_v46 }
 0x120   :  { %vm738_vm13 = vmand %vm706_vm11, %vm545_vm7 }
 0x121   :  { %v137_v10 = vpop.permute.xlu1 %136  ;;  %vm2541_vm8 = vmand %vm738_vm13, %vm562_vm1  ;;  %vm563_vm13 = vcmp.ge.f32.partialorder %v2475_v50, %v2174_v51  ;;  %v664_v50 = vand.u32 2147483648, %v2529_v6 }
 0x122   :  { %v2901_v20 = vsel %vm2541_vm8, 4294967295, %v2900_v20  ;;  %v1288_v23 = vsel %vm2541_vm8, 1.0, %v1556_v60  ;;  %v162_v30 = vsub.f32 %v137_v10, %v2116_v52 }
 0x123   :  { %1389 = vmatprep.mubr.f32.mxu1 %v1288_v23 }
 0x124   :  { %v178_v14 = vmul.f32 %v162_v30, %v162_v30 }
 0x125   :  { %v501_v42 = vpop.permute.xlu1 %500 }
 0x126   :  { %vm529_vm4 = vcmp.eq.s32.totalorder %v501_v42, %v2164_v43  ;;  %v295_v35 = vadd.f32 %v279_v62, %v178_v14 }
 0x127   :  { %vm707_vm7 = vmand %vm529_vm4, %vm691_vm15  ;;  %vm661_vm15 = vcmp.eq.f32.partialorder %v2529_v6, inf  ;;  %vm447_vm4 = vcmp.eq.s32.totalorder %v1690_v19, %v1682_v17 }
 0x128   :  { %vm739_vm11 = vmand %vm707_vm7, %vm546_vm9  ;;  %vm663_vm9 = vcmp.eq.f32.partialorder %v2529_v6, 0.0  ;;  %vm446_vm7 = vcmp.eq.s32.totalorder %v1710_v22, %v1682_v17 }
 0x129   :  { %v1497_v26 = vpop.eup %1496  ;;  %v142_v58 = vpop.permute.xlu1 %141  ;;  %vm2557_vm1 = vmand %vm739_vm11, %vm563_vm13  ;;  %vm654_vm11 = vcmp.eq.f32.partialorder %v2533_v27, inf  ;;  %vm656_vm13 = vcmp.eq.f32.partialorder %v2533_v27, 0.0 }
 0x12a   :  { %v2903_v34 = vsel %vm2557_vm1, 4294967295, %v2902_v34  ;;  %v660_v33 = vmul.f32 %v1497_v26, %v2529_v6  ;;  %v163_v45 = vsub.f32 %v142_v58, %v2116_v52  ;;  %v1289_v29 = vsel %vm2557_vm1, 1.0, %v1556_v60 }
 0x12b   :  { %1390 = vmatmul.mubr.f32.gmra.mxu1 %v1289_v29 }
 0x12c   :  { %v1499_v9 = vpop.eup %1498  ;;  %v662_v52 = vsel %vm661_vm15, %v2529_v6, %v660_v33  ;;  %v179_v32 = vmul.f32 %v163_v45, %v163_v45  ;;  %vm2591_vm15 = vmxor %vm445_vm0, %vm1555_vm2 }
 0x12d   :  { %v665_v44 = vsel %vm663_vm9, %v664_v50, %v662_v52  ;;  %v653_v56 = vmul.f32 %v1499_v9, %v2533_v27  ;;  %vm448_vm9 = vcmp.eq.s32.totalorder %v1685_v18, %v1682_v17  ;;  %vm2606_vm0 = vmxor %vm446_vm7, %vm1555_vm2 }
 0x12e   :  { %725 = vst [vmem:[#allocation7 + $0x68] sm:$0xff] %v665_v44  ;;  %v296_v31 = vadd.f32 %v280_v8, %v179_v32  ;;  %v356_v3 = vpop.permute.xlu1 %355  ;;  %vm2611_vm8 = vmxor %vm448_vm9, %vm1555_vm2 }
 0x12f   :  { %v655_v12 = vsel %vm654_vm11, %v2533_v27, %v653_v56  ;;  %v380_v54 = vsub.f32 %v356_v3, %v2124_v55  ;;  %vm694_vm11 = vmxor %vm447_vm4, %vm1555_vm2  ;;  %vm564_vm2 = vcmp.ge.f32.partialorder %v2533_v27, %v2174_v51 }
 0x130   :  { %v658_v61 = vsel %vm656_vm13, %v657_v40, %v655_v12  ;;  %v413_v28 = vadd.f32 %v397_v37, %v296_v31  ;;  %vm532_vm13 = vcmp.eq.s32.totalorder %v510_v49, %v2164_v43 }
 0x131   :  { %724 = vst [vmem:[#allocation7 + $0x60] sm:$0xff] %v658_v61  ;;  %v396_v4 = vmul.f32 %v380_v54, %v380_v54  ;;  %vm710_vm1 = vmand %vm532_vm13, %vm694_vm11 }
 0x132   :  { %1500 = vrsqrt.f32 %v413_v28  ;;  %v678_v10 = vand.u32 2147483648, %v413_v28 }
 0x133   :  { %v412_v18 = vadd.f32 %v396_v4, %v295_v35  ;;  %v504_v55 = vpop.permute.xlu1 %503 }
 0x134   :  { %vm530_vm4 = vcmp.eq.s32.totalorder %v504_v55, %v2164_v43 }
 0x135   :  { %1502 = vrsqrt.f32 %v412_v18  ;;  %vm708_vm7 = vmand %vm530_vm4, %vm2591_vm15  ;;  %vm549_vm14 = vcmp.le.f32.partialorder %v412_v18, %v2170_v46  ;;  %vm548_vm15 = vcmp.le.f32.partialorder %v2529_v6, %v2170_v46 }
 0x136   :  { %vm740_vm5 = vmand %vm708_vm7, %vm547_vm6  ;;  %vm550_vm7 = vcmp.le.f32.partialorder %v413_v28, %v2170_v46 }
 0x137   :  { %vm2621_vm12 = vmand %vm710_vm1, %vm549_vm14  ;;  %v507_v19 = vpop.permute.xlu1 %506  ;;  %vm566_vm14 = vcmp.ge.f32.partialorder %v412_v18, %v2174_v51 }
 0x138   :  { %vm531_vm9 = vcmp.eq.s32.totalorder %v507_v19, %v2164_v43  ;;  %vm2628_vm11 = vmand %vm740_vm5, %vm564_vm2  ;;  %vm565_vm5 = vcmp.ge.f32.partialorder %v2529_v6, %v2174_v51 }
 0x139   :  { %vm709_vm6 = vmand %vm531_vm9, %vm2606_vm0  ;;  %v1290_v47 = vsel %vm2628_vm11, 1.0, %v1556_v60 }
 0x13a   :  { %vm741_vm1 = vmand %vm709_vm6, %vm548_vm15  ;;  %1392 = vmatprep.mubr.f32.mxu1 %v1290_v47  ;;  %vm567_vm15 = vcmp.ge.f32.partialorder %v413_v28, %v2174_v51  ;;  %v671_v51 = vand.u32 2147483648, %v412_v18 }
 0x13b   :  { %v513_v63 = vpop.permute.xlu1 %512  ;;  %vm2642_vm13 = vmand %vm741_vm1, %vm565_vm5  ;;  %vm670_vm1 = vcmp.eq.f32.partialorder %v412_v18, 0.0 }
 0x13c   :  { %vm533_vm4 = vcmp.eq.s32.totalorder %v513_v63, %v2164_v43  ;;  %v1291_v53 = vsel %vm2642_vm13, 1.0, %v1556_v60  ;;  %vm2652_vm0 = vmand %vm2621_vm12, %vm566_vm14  ;;  %vm675_vm12 = vcmp.eq.f32.partialorder %v413_v28, inf  ;;  %vm668_vm14 = vcmp.eq.f32.partialorder %v412_v18, inf }
 0x13d   :  { %vm711_vm2 = vmand %vm533_vm4, %vm2611_vm8  ;;  %1393 = vmatmul.mubr.f32.gmra.mxu1 %v1291_v53  ;;  %v1292_v43 = vsel %vm2652_vm0, 1.0, %v1556_v60  ;;  %vm677_vm8 = vcmp.eq.f32.partialorder %v413_v28, 0.0 }
 0x13e   :  { %vm743_vm9 = vmand %vm711_vm2, %vm550_vm7  ;;  %1395 = vmatprep.mubr.f32.mxu1 %v1292_v43 }
 0x13f   :  { %v1501_v6 = vpop.eup %1500  ;;  %vm2663_vm6 = vmand %vm743_vm9, %vm567_vm15 }
 0x140   :  { %v674_v16 = vmul.f32 %v1501_v6, %v413_v28  ;;  %v1293_v46 = vsel %vm2663_vm6, 1.0, %v1556_v60  ;;  %v2673_v60 = vstv %s985_s12 }
 0x141   :  { %1396 = vmatmul.mubr.f32.gmra.mxu1 %v1293_v46 }
 0x142   :  { %v1503_v23 = vpop.eup %1502  ;;  %v676_v42 = vsel %vm675_vm12, %v413_v28, %v674_v16  ;;  %vm2922_vm12 = vnez %v2887_v11 }
 0x143   :  { %v679_v25 = vsel %vm677_vm8, %v678_v10, %v676_v42  ;;  %v667_v26 = vmul.f32 %v1503_v23, %v412_v18 }
 0x144   :  { %727 = vst [vmem:[#allocation7 + $0x78] sm:$0xff] %v679_v25 }
 0x145   :  { %v669_v30 = vsel %vm668_vm14, %v412_v18, %v667_v26  ;;  %vm2923_vm14 = vnez %v2879_v1 }
 0x146   :  { %v672_v58 = vsel %vm670_vm1, %v671_v51, %v669_v30 }
 0x147   :  { %726 = vst [vmem:[#allocation7 + $0x70] sm:$0xff] %v672_v58 }
 0x196   :  { %v1376_v33 = vpop.f32.mrf.mxu0 }
 0x197   :  { %v1100_v39 = vmin.f32 %v1376_v33, %v2673_v60  ;;  %vm988_vm4 = vcmp.le.f32.partialorder %v1376_v33, %v2673_v60 }
 0x198   :  { %v906_v45 = vpop.f32.mrf.mxu0  ;;  %vm1004_vm2 = vmand %vm2297_vm3, %vm988_vm4 }
 0x199   :  { %vm987_vm5 = vcmp.le.f32.partialorder %v906_v45, %v2673_v60  ;;  %v1099_v29 = vmin.f32 %v906_v45, %v2673_v60  ;;  %1133 = vrot.lane.b32.xlu0 %v1100_v39, %s1557_s1 }
 0x19a   :  { %vm2682_vm7 = vmand %vm2185_vm10, %vm987_vm5  ;;  %v1379_v9 = vpop.f32.mrf.mxu0 }
 0x19b   :  { %1131 = vrot.lane.b32.xlu1 %v1099_v29, %s1557_s1  ;;  %vm990_vm9 = vcmp.le.f32.partialorder %v1379_v9, %v2673_v60  ;;  %v1102_v8 = vmin.f32 %v1379_v9, %v2673_v60  ;;  %vm1019_vm15 = vmpackc.low %vm1004_vm2, %vm2682_vm7  ;;  %vm2924_vm2 = vnez %v2889_v7 }
 0x19c   :  { %v916_v52 = vpop.f32.mrf.mxu0  ;;  %vm1006_vm10 = vmand %vm2922_vm12, %vm990_vm9 }
 0x19d   :  { %vm989_vm8 = vcmp.le.f32.partialorder %v916_v52, %v2673_v60  ;;  %v1101_v59 = vmin.f32 %v916_v52, %v2673_v60  ;;  %1137 = vrot.lane.b32.xlu0 %v1102_v8, %s1557_s1 }
 0x19e   :  { %vm1005_vm3 = vmand %vm2923_vm14, %vm989_vm8  ;;  %vm2928_vm14 = vnez %v2895_v21 }
 0x19f   :  { %vm1020_vm1 = vmpackc.low %vm1006_vm10, %vm1005_vm3  ;;  %1135 = vrot.lane.b32.xlu1 %v1101_v59, %s1557_s1 }
 0x1a0   :  { %vm1021_vm5 = vmpackc.even %vm1020_vm1, %vm1019_vm15  ;;  %vm2927_vm15 = vnez %v2891_v41 }
 0x1a1   :  { %v1031_v48 = vsel %vm1021_vm5, 16843009, %v1551_v2  ;;  %vm2929_vm5 = vnez %v2893_v38 }
 0x1a2   :  { %v1035_v32 = vunpack.c.0.s8 %v1031_v48  ;;  %v1036_v44 = vunpack.c.1.s8 %v1031_v48  ;;  %v1037_v56 = vunpack.c.2.s8 %v1031_v48  ;;  %v1038_v11 = vunpack.c.3.s8 %v1031_v48 }
 0x1a4   :  { %v1051_v14 = vpack.c.b16 %v1035_v32, %v1035_v32  ;;  %v1053_v40 = vpack.c.b16 %v1036_v44, %v1036_v44  ;;  %v1055_v37 = vpack.c.b16 %v1037_v56, %v1037_v56  ;;  %v1057_v31 = vpack.c.b16 %v1038_v11, %v1038_v11 }
 0x1a6   :  { %v1052_v3 = vpack.c.b8 %v1051_v14, %v1051_v14  ;;  %v1054_v49 = vpack.c.b8 %v1053_v40, %v1053_v40  ;;  %v1056_v62 = vpack.c.b8 %v1055_v37, %v1055_v37  ;;  %v1058_v12 = vpack.c.b8 %v1057_v31, %v1057_v31 }
 0x1a8   :  { %1083 = vst [vmem:[%s2860_s7] sm:$0x3] %v1052_v3  ;;  %1084 = vst [vmem:[%s2860_s7 + $0x2] sm:$0x3] %v1054_v49 }
 0x1a9   :  { %v1382_v1 = vpop.f32.mrf.mxu0  ;;  %1085 = vst [vmem:[%s2860_s7 + $0x4] sm:$0x3] %v1056_v62  ;;  %1086 = vst [vmem:[%s2860_s7 + $0x6] sm:$0x3] %v1058_v12 }
 0x1aa   :  { %v1104_v54 = vmin.f32 %v1382_v1, %v2673_v60  ;;  %vm992_vm7 = vcmp.le.f32.partialorder %v1382_v1, %v2673_v60 }
 0x1ab   :  { %v926_v61 = vpop.f32.mrf.mxu0  ;;  %vm1008_vm12 = vmand %vm2927_vm15, %vm992_vm7 }
 0x1ac   :  { %v1103_v28 = vmin.f32 %v926_v61, %v2673_v60  ;;  %1141 = vrot.lane.b32.xlu0 %v1104_v54, %s1557_s1  ;;  %vm991_vm4 = vcmp.le.f32.partialorder %v926_v61, %v2673_v60 }
 0x1ad   :  { %vm2722_vm9 = vmand %vm2924_vm2, %vm991_vm4 }
 0x1ae   :  { %1139 = vrot.lane.b32.xlu1 %v1103_v28, %s1557_s1  ;;  %vm1022_vm8 = vmpackc.low %vm1008_vm12, %vm2722_vm9  ;;  %vm2930_vm12 = vnez %v2897_v0 }
 0x1bf   :  { %v1385_v35 = vpop.f32.mrf.mxu0 }
 0x1c0   :  { %vm994_vm10 = vcmp.le.f32.partialorder %v1385_v35, %v2673_v60  ;;  %v1106_v4 = vmin.f32 %v1385_v35, %v2673_v60 }
 0x1c1   :  { %v936_v24 = vpop.f32.mrf.mxu0  ;;  %vm1010_vm3 = vmand %vm2928_vm14, %vm994_vm10 }
 0x1c2   :  { %vm993_vm1 = vcmp.le.f32.partialorder %v936_v24, %v2673_v60  ;;  %v1105_v7 = vmin.f32 %v936_v24, %v2673_v60  ;;  %1145 = vrot.lane.b32.xlu0 %v1106_v4, %s1557_s1 }
 0x1c3   :  { %vm1009_vm4 = vmand %vm2929_vm5, %vm993_vm1  ;;  %vm2934_vm5 = vnez %v2903_v34 }
 0x1c4   :  { %vm1023_vm7 = vmpackc.low %vm1010_vm3, %vm1009_vm4  ;;  %1143 = vrot.lane.b32.xlu1 %v1105_v7, %s1557_s1 }
 0x1c5   :  { %vm1024_vm2 = vmpackc.even %vm1023_vm7, %vm1022_vm8  ;;  %vm2933_vm8 = vnez %v2899_v5 }
 0x1c6   :  { %v1032_v41 = vsel %vm1024_vm2, 16843009, %v1551_v2  ;;  %vm2935_vm2 = vnez %v2901_v20 }
 0x1c7   :  { %v1039_v18 = vunpack.c.0.s8 %v1032_v41  ;;  %v1040_v55 = vunpack.c.1.s8 %v1032_v41  ;;  %v1041_v13 = vunpack.c.2.s8 %v1032_v41  ;;  %v1042_v21 = vunpack.c.3.s8 %v1032_v41 }
 0x1c9   :  { %v1059_v17 = vpack.c.b16 %v1039_v18, %v1039_v18  ;;  %v1061_v19 = vpack.c.b16 %v1040_v55, %v1040_v55  ;;  %v1063_v47 = vpack.c.b16 %v1041_v13, %v1041_v13  ;;  %v1065_v63 = vpack.c.b16 %v1042_v21, %v1042_v21 }
 0x1cb   :  { %v1060_v53 = vpack.c.b8 %v1059_v17, %v1059_v17  ;;  %v1062_v43 = vpack.c.b8 %v1061_v19, %v1061_v19  ;;  %v1064_v6 = vpack.c.b8 %v1063_v47, %v1063_v47  ;;  %v1066_v16 = vpack.c.b8 %v1065_v63, %v1065_v63 }
 0x1cd   :  { %1087 = vst [vmem:[%s2860_s7 + $0x8] sm:$0x3] %v1060_v53  ;;  %1088 = vst [vmem:[%s2860_s7 + $0xa] sm:$0x3] %v1062_v43 }
 0x1ce   :  { %1089 = vst [vmem:[%s2860_s7 + $0xc] sm:$0x3] %v1064_v6  ;;  %1090 = vst [vmem:[%s2860_s7 + $0xe] sm:$0x3] %v1066_v16 }
 0x1d5   :  { %v1388_v38 = vpop.f32.mrf.mxu1 }
 0x1d6   :  { %v1108_v46 = vmin.f32 %v1388_v38, %v2673_v60  ;;  %vm996_vm15 = vcmp.le.f32.partialorder %v1388_v38, %v2673_v60 }
 0x1d7   :  { %v946_v10 = vpop.f32.mrf.mxu1  ;;  %vm1012_vm14 = vmand %vm2933_vm8, %vm996_vm15 }
 0x1d8   :  { %v1107_v23 = vmin.f32 %v946_v10, %v2673_v60  ;;  %1149 = vrot.lane.b32.xlu0 %v1108_v46, %s1557_s1  ;;  %vm995_vm9 = vcmp.le.f32.partialorder %v946_v10, %v2673_v60 }
 0x1d9   :  { %vm2761_vm10 = vmand %vm2930_vm12, %vm995_vm9 }
 0x1da   :  { %1147 = vrot.lane.b32.xlu1 %v1107_v23, %s1557_s1  ;;  %vm1025_vm1 = vmpackc.low %vm1012_vm14, %vm2761_vm10 }
 0x1eb   :  { %v1391_v25 = vpop.f32.mrf.mxu1 }
 0x1ec   :  { %vm998_vm3 = vcmp.le.f32.partialorder %v1391_v25, %v2673_v60  ;;  %v1110_v26 = vmin.f32 %v1391_v25, %v2673_v60 }
 0x1ed   :  { %v956_v51 = vpop.f32.mrf.mxu1  ;;  %vm1014_vm4 = vmand %vm2934_vm5, %vm998_vm3 }
 0x1ee   :  { %vm997_vm7 = vcmp.le.f32.partialorder %v956_v51, %v2673_v60  ;;  %v1109_v0 = vmin.f32 %v956_v51, %v2673_v60  ;;  %1153 = vrot.lane.b32.xlu0 %v1110_v26, %s1557_s1 }
 0x1ef   :  { %vm1013_vm9 = vmand %vm2935_vm2, %vm997_vm7 }
 0x1f0   :  { %vm1026_vm15 = vmpackc.low %vm1014_vm4, %vm1013_vm9  ;;  %1151 = vrot.lane.b32.xlu1 %v1109_v0, %s1557_s1 }
 0x1f1   :  { %vm1027_vm12 = vmpackc.even %vm1026_vm15, %vm1025_vm1 }
 0x1f2   :  { %v1033_v5 = vsel %vm1027_vm12, 16843009, %v1551_v2 }
 0x1f3   :  { %v1043_v30 = vunpack.c.0.s8 %v1033_v5  ;;  %v1044_v58 = vunpack.c.1.s8 %v1033_v5  ;;  %v1045_v33 = vunpack.c.2.s8 %v1033_v5  ;;  %v1046_v34 = vunpack.c.3.s8 %v1033_v5 }
 0x1f5   :  { %v1067_v39 = vpack.c.b16 %v1043_v30, %v1043_v30  ;;  %v1069_v45 = vpack.c.b16 %v1044_v58, %v1044_v58  ;;  %v1071_v29 = vpack.c.b16 %v1045_v33, %v1045_v33  ;;  %v1073_v50 = vpack.c.b16 %v1046_v34, %v1046_v34 }
 0x1f7   :  { %v1068_v9 = vpack.c.b8 %v1067_v39, %v1067_v39  ;;  %v1070_v8 = vpack.c.b8 %v1069_v45, %v1069_v45  ;;  %v1072_v52 = vpack.c.b8 %v1071_v29, %v1071_v29  ;;  %v1074_v59 = vpack.c.b8 %v1073_v50, %v1073_v50 }
 0x1f9   :  { %1091 = vst [vmem:[%s2860_s7 + $0x10] sm:$0x3] %v1068_v9  ;;  %1092 = vst [vmem:[%s2860_s7 + $0x12] sm:$0x3] %v1070_v8 }
 0x1fa   :  { %1093 = vst [vmem:[%s2860_s7 + $0x14] sm:$0x3] %v1072_v52  ;;  %1094 = vst [vmem:[%s2860_s7 + $0x16] sm:$0x3] %v1074_v59 }
 0x1fd   :  { %v1394_v20 = vpop.f32.mrf.mxu1 }
 0x1fe   :  { %v1112_v48 = vmin.f32 %v1394_v20, %v2673_v60  ;;  %vm1000_vm10 = vcmp.le.f32.partialorder %v1394_v20, %v2673_v60 }
 0x1ff   :  { %v966_v32 = vpop.f32.mrf.mxu1  ;;  %vm1016_vm3 = vmand %vm2642_vm13, %vm1000_vm10 }
 0x200   :  { %vm999_vm8 = vcmp.le.f32.partialorder %v966_v32, %v2673_v60  ;;  %v1111_v44 = vmin.f32 %v966_v32, %v2673_v60  ;;  %1157 = vrot.lane.b32.xlu0 %v1112_v48, %s1557_s1 }
 0x201   :  { %vm2799_vm14 = vmand %vm2628_vm11, %vm999_vm8  ;;  %v1397_v11 = vpop.f32.mrf.mxu1 }
 0x202   :  { %vm1002_vm1 = vcmp.le.f32.partialorder %v1397_v11, %v2673_v60  ;;  %v1114_v14 = vmin.f32 %v1397_v11, %v2673_v60  ;;  %1155 = vrot.lane.b32.xlu1 %v1111_v44, %s1557_s1  ;;  %vm1028_vm5 = vmpackc.low %vm1016_vm3, %vm2799_vm14 }
 0x203   :  { %v976_v40 = vpop.f32.mrf.mxu1  ;;  %vm1018_vm11 = vmand %vm2663_vm6, %vm1002_vm1 }
 0x204   :  { %vm1001_vm4 = vcmp.le.f32.partialorder %v976_v40, %v2673_v60  ;;  %v1113_v22 = vmin.f32 %v976_v40, %v2673_v60  ;;  %1161 = vrot.lane.b32.xlu0 %v1114_v14, %s1557_s1 }
 0x205   :  { %vm1017_vm13 = vmand %vm2652_vm0, %vm1001_vm4  ;;  %vm1179_vm0 = vcmask 7168  }
 0x206   :  { %vm1029_vm7 = vmpackc.low %vm1018_vm11, %vm1017_vm13  ;;  %1159 = vrot.lane.b32.xlu1 %v1113_v22, %s1557_s1 }
 0x207   :  { %vm1030_vm2 = vmpackc.even %vm1029_vm7, %vm1028_vm5 }
 0x208   :  { %v1034_v57 = vsel %vm1030_vm2, 16843009, %v1551_v2 }
 0x209   :  { %v1047_v37 = vunpack.c.0.s8 %v1034_v57  ;;  %v1048_v31 = vunpack.c.1.s8 %v1034_v57  ;;  %v1049_v3 = vunpack.c.2.s8 %v1034_v57  ;;  %v1050_v27 = vunpack.c.3.s8 %v1034_v57 }
 0x20b   :  { %v1075_v49 = vpack.c.b16 %v1047_v37, %v1047_v37  ;;  %v1077_v62 = vpack.c.b16 %v1048_v31, %v1048_v31  ;;  %v1079_v12 = vpack.c.b16 %v1049_v3, %v1049_v3  ;;  %v1081_v1 = vpack.c.b16 %v1050_v27, %v1050_v27  ;;  %v1134_v36 = vpop.permute.xlu0 %1133 }
 0x20c   :  { %v1181_v4 = vsel %vm1179_vm0, %v1134_v36, 0.0 }
 0x20d   :  { %v1076_v60 = vpack.c.b8 %v1075_v49, %v1075_v49  ;;  %v1078_v54 = vpack.c.b8 %v1077_v62, %v1077_v62  ;;  %v1080_v61 = vpack.c.b8 %v1079_v12, %v1079_v12  ;;  %v1082_v28 = vpack.c.b8 %v1081_v1, %v1081_v1  ;;  %v1132_v2 = vpop.permute.xlu1 %1131 }
 0x20e   :  { %v1180_v35 = vsel %vm1179_vm0, %v1132_v2, 0.0 }
 0x20f   :  { %1095 = vst [vmem:[%s2860_s7 + $0x18] sm:$0x3] %v1076_v60  ;;  %1096 = vst [vmem:[%s2860_s7 + $0x1a] sm:$0x3] %v1078_v54  ;;  %v1182_v7 = vadd.f32 %v1181_v4, %v1180_v35  ;;  %v1138_v41 = vpop.permute.xlu0 %1137 }
 0x210   :  { %1097 = vst [vmem:[%s2860_s7 + $0x1c] sm:$0x3] %v1080_v61  ;;  %1098 = vst [vmem:[%s2860_s7 + $0x1e] sm:$0x3] %v1082_v28  ;;  %v1185_v13 = vsel %vm1179_vm0, %v1138_v41, 0.0  ;;  %s1558_s7 = smov [#allocation7]  }
 0x211   :  { %v1136_v15 = vpop.permute.xlu1 %1135  ;;  %s1228_s16 = sshll.u32 %s1558_s7, 4  ;;  %s1229_s16 = int_to_ptr.vmem [resolvable:$true] %s1228_s16 }
 0x212   :  { %v1183_v24 = vsel %vm1179_vm0, %v1136_v15, 0.0  ;;  %s1516_s17 = scalar_lea.vmem %s1229_s16, 2048  ;;  %p1521_p6 = scmp.lt.s32.totalorder %s1229_s16, %s1229_s16 }
 0x213   :  { %v1184_v18 = vadd.f32 %v1183_v24, %v1182_v7  ;;  %p1517_p5 = scmp.ne.s32.totalorder %s1229_s16, %s1516_s17  ;;  %p1522_p7 = scmp.lt.s32.totalorder %s1516_s17, %s1516_s17 }
 0x215   :  { %v1186_v17 = vadd.f32 %v1185_v13, %v1184_v18  ;;  %p1523_p8 = por %p1522_p7, %p1521_p6 }
 0x217   :  { %p1524_p9 = pnand %p1523_p8, %p1517_p5 }
 0x21e   :  { %v1142_v19 = vpop.permute.xlu0 %1141 }
 0x21f   :  { %v1189_v53 = vsel %vm1179_vm0, %v1142_v19, 0.0 }
 0x220   :  { %v1140_v55 = vpop.permute.xlu1 %1139 }
 0x221   :  { %v1187_v21 = vsel %vm1179_vm0, %v1140_v55, 0.0 }
 0x222   :  { %v1188_v47 = vadd.f32 %v1187_v21, %v1186_v17 }
 0x224   :  { %v1190_v6 = vadd.f32 %v1189_v53, %v1188_v47 }
 0x234   :  { %v1146_v16 = vpop.permute.xlu0 %1145 }
 0x235   :  { %v1193_v10 = vsel %vm1179_vm0, %v1146_v16, 0.0 }
 0x236   :  { %v1144_v63 = vpop.permute.xlu1 %1143 }
 0x237   :  { %v1191_v43 = vsel %vm1179_vm0, %v1144_v63, 0.0 }
 0x238   :  { %v1192_v38 = vadd.f32 %v1191_v43, %v1190_v6 }
 0x23a   :  { %v1194_v42 = vadd.f32 %v1193_v10, %v1192_v38 }
 0x24a   :  { %v1150_v25 = vpop.permute.xlu0 %1149 }
 0x24b   :  { %v1197_v0 = vsel %vm1179_vm0, %v1150_v25, 0.0 }
 0x24c   :  { %v1148_v46 = vpop.permute.xlu1 %1147 }
 0x24d   :  { %v1195_v23 = vsel %vm1179_vm0, %v1148_v46, 0.0 }
 0x24e   :  { %v1196_v26 = vadd.f32 %v1195_v23, %v1194_v42 }
 0x250   :  { %v1198_v58 = vadd.f32 %v1197_v0, %v1196_v26 }
 0x260   :  { %v1154_v30 = vpop.permute.xlu0 %1153 }
 0x261   :  { %v1201_v39 = vsel %vm1179_vm0, %v1154_v30, 0.0 }
 0x262   :  { %v1152_v51 = vpop.permute.xlu1 %1151 }
 0x263   :  { %v1199_v5 = vsel %vm1179_vm0, %v1152_v51, 0.0 }
 0x264   :  { %v1200_v33 = vadd.f32 %v1199_v5, %v1198_v58 }
 0x266   :  { %v1202_v45 = vadd.f32 %v1201_v39, %v1200_v33 }
 0x272   :  { %v1158_v34 = vpop.permute.xlu0 %1157 }
 0x273   :  { %v1205_v8 = vsel %vm1179_vm0, %v1158_v34, 0.0 }
 0x274   :  { %v1156_v29 = vpop.permute.xlu1 %1155 }
 0x275   :  { %v1203_v50 = vsel %vm1179_vm0, %v1156_v29, 0.0 }
 0x276   :  { %v1204_v9 = vadd.f32 %v1203_v50, %v1202_v45  ;;  %v1162_v52 = vpop.permute.xlu0 %1161 }
 0x277   :  { %v1209_v44 = vsel %vm1179_vm0, %v1162_v52, 0.0 }
 0x278   :  { %v1206_v59 = vadd.f32 %v1205_v8, %v1204_v9  ;;  %v1160_v20 = vpop.permute.xlu1 %1159 }
 0x279   :  { %v1207_v48 = vsel %vm1179_vm0, %v1160_v20, 0.0 }
 0x27a   :  { %v1208_v32 = vadd.f32 %v1207_v48, %v1206_v59 }
 0x27c   :  { %v1210_v56 = vadd.f32 %v1209_v44, %v1208_v32 }
 0x27e   :  { %1211 = vadd.xlane.f32.xlu1 %v1210_v56 }
 0x27f   :  { %1527 = shalt.err (!%p1524_p9)
}
 0x280   :  { %s1559_s18 = smov 128   ;;  %s1560_s19 = smov 8  }
 0x281   :  { %1234 = dma.vmem_to_hbm [thread:$0]  %s1229_s16, 2048, %s2859_s6, [#allocation4], %s1559_s18, %s1559_s18, %s1560_s19  }
 0x282   :  { %s1561_s24 = smov [#allocation8]  }
 0x307   :  { %v1212_v11 = vpop.xlane.xlu1 %1211 }
 0x308   :  { %v1213_v14 = vrot.slane %v1212_v11, 4 }
 0x30a   :  { %v1214_v40 = vadd.f32 %v1213_v14, %v1212_v11 }
 0x30c   :  { %v1215_v22 = vrot.slane %v1214_v40, 2 }
 0x30e   :  { %v1216_v57 = vadd.f32 %v1215_v22, %v1214_v40 }
 0x310   :  { %v1217_v37 = vrot.slane %v1216_v57, 1 }
 0x312   :  { %v1218_v31 = vadd.f32 %v1217_v37, %v1216_v57 }
 0x314   :  { %1430 = vpush %v1218_v31 }
 0x345   :  { %s1431_s3 = spop %1430 }
 0x346   :  { %p1432_p10 = scmp.lt.s32.totalorder %s1431_s3, 0  ;;  %s1433_s22 = sceil.f32 %s1431_s3 }
 0x347   :  { %s1434_s23 = sfloor.f32 %s1431_s3 }
 0x348   :  { %s2939_s22 = smov (!%p1432_p10, %s1433_s22), %s1434_s23 }
 0x349   :  { %s1436_s2 = scvt.f32.s32 %s2939_s22 }
 0x34b   :  { %1222 = sst [smem:[#allocation8]] %s1436_s2 }
 0x34c   :  { %1244 = dma.smem_to_hbm %s1561_s24, 16, %s2861_s8, [#allocation5]  }
 0x34d   :  { %1546 = dma.done.wait [#allocation4], 2048  }
 0x34e   :  { %1547 = vsyncadd [#allocation4], 4294965248 }
 0x34f   :  { %1548 = dma.done.wait [#allocation5], 16  }
 0x350   :  { %1549 = vsyncadd [#allocation5], 4294967280 }
 0x351   :  { %1253 = sfence }
 0x352   :  { %1254 = vsyncpa [#allocation4], 1 }
 0x353   :  { %1255 = vsyncpa [#allocation5], 1 }
 0x354   :  { %1256 = vsyncpa [#allocation6], 1 }

</bundles_post_ra>
